<compile_context>
chip_gen: v5e
topology: v5e:2x2
jax: 0.10.0
libtpu: 0.0.40
codegen_flags: <defaults>
</compile_context>

<pallas_src>
import jax
import jax.numpy as jnp
from jax import lax
from jax.experimental import pallas as pl
from jax.experimental.pallas import tpu as pltpu

LN_EPS = 1e-5
OUT_PAD = 128  # lane-dense padded width of the output head


def _round_up(n, m):
    return ((n + m - 1) // m) * m


def _ln_relu(h, p):
    """Bias-add + LayerNorm + ReLU with fused statistics.

    h: [TB, N] f32 pre-activation (bias NOT yet added)
    p: [3, N]  f32 rows = (bias, gamma, beta)
    """
    bias, gamma, beta = p[0:1, :], p[1:2, :], p[2:3, :]
    h = h + bias
    # Single pass: mean and mean-of-squares issued together; var = E[h^2] - E[h]^2.
    mu = jnp.mean(h, axis=-1, keepdims=True)
    ms = jnp.mean(h * h, axis=-1, keepdims=True)
    var = ms - mu * mu
    scale = lax.rsqrt(var + LN_EPS) * gamma  # gamma folded into the normalize scale
    return jnp.maximum((h - mu) * scale + beta, 0.0)


def dqn_kernel(x_ref,
               w1_ref, p1_ref,
               w2_ref, p2_ref,
               w3_ref, p3_ref,
               w4_ref, b4_ref,
               out_ref):
    # TODO(synk): Dropout layers are identity (eval semantics); training-mode
    # stochastic dropout would use pltpu.prng_seed/prng_random_bits.
    x = x_ref[...].astype(jnp.bfloat16)

    # Layer 1: Linear -> LayerNorm -> ReLU
    h = jnp.dot(x, w1_ref[...], preferred_element_type=jnp.float32)
    h = _ln_relu(h, p1_ref[...])

    # Layer 2: Linear -> LayerNorm -> ReLU
    h = jnp.dot(h.astype(jnp.bfloat16), w2_ref[...], preferred_element_type=jnp.float32)
    h = _ln_relu(h, p2_ref[...])

    # Layer 3: Linear -> LayerNorm -> ReLU
    h = jnp.dot(h.astype(jnp.bfloat16), w3_ref[...], preferred_element_type=jnp.float32)
    h = _ln_relu(h, p3_ref[...])

    # Output head: Linear(128, OUT_PAD) — padded columns are zero, sliced off outside.
    out = jnp.dot(h.astype(jnp.bfloat16), w4_ref[...],
                  preferred_element_type=jnp.float32) + b4_ref[...]
    out_ref[...] = out.astype(out_ref.dtype)


def dqn_forward(x, params, action_dim, *, tb=256):
    """x: [B, input_dim] float32. params: (w1,p1,w2,p2,w3,p3,w4,b4)."""
    w1, p1, w2, p2, w3, p3, w4, b4 = params
    B, in_dim = x.shape

    # Batch tile: 256 rows (v6e/v7x MXU) unless the batch itself is smaller.
    tb = min(tb, _round_up(B, 8))
    B_pad = _round_up(B, tb)
    if B_pad != B:
        x = jnp.pad(x, ((0, B_pad - B), (0, 0)))
    grid = (B_pad // tb,)

    def resident(shape):
        # Constant index_map: param is DMA'd once and stays resident in VMEM.
        return pl.BlockSpec(shape, lambda i: (0, 0))

    out = pl.pallas_call(
        dqn_kernel,
        out_shape=jax.ShapeDtypeStruct((B_pad, OUT_PAD), jnp.float32),
        grid=grid,
        in_specs=[
            pl.BlockSpec((tb, in_dim), lambda i: (i, 0)),   # x: batch-tiled
            resident(w1.shape), resident(p1.shape),
            resident(w2.shape), resident(p2.shape),
            resident(w3.shape), resident(p3.shape),
            resident(w4.shape), resident(b4.shape),
        ],
        out_specs=pl.BlockSpec((tb, OUT_PAD), lambda i: (i, 0)),
        compiler_params=pltpu.CompilerParams(
            dimension_semantics=("parallel",)),             # v7x: 2 TCs split batch blocks
    )(x, w1, p1, w2, p2, w3, p3, w4, b4)

    return out[:B, :action_dim]


def init_params(key, input_dim, action_dim):
    """Deterministic synthetic parameters matching the PyTorch module shapes.

    Linear weights are [in, out] bf16. For layers with LayerNorm, the per-feature
    vectors are packed into a [3, out] f32 array of rows (bias, gamma=1, beta=0).
    The output head is zero-padded from action_dim to OUT_PAD columns.
    """
    dims = [(input_dim, 512), (512, 256), (256, 128), (128, action_dim)]
    params = []
    keys = jax.random.split(key, len(dims))
    for i, (fan_in, fan_out) in enumerate(dims):
        kw, kb = jax.random.split(keys[i])
        bound = 1.0 / jnp.sqrt(fan_in)
        w = jax.random.uniform(kw, (fan_in, fan_out), jnp.float32, -bound, bound)
        b = jax.random.uniform(kb, (fan_out,), jnp.float32, -bound, bound)
        if i < 3:  # layers followed by LayerNorm
            packed = jnp.stack([b,
                                jnp.ones((fan_out,), jnp.float32),    # gamma
                                jnp.zeros((fan_out,), jnp.float32)])  # beta
            params.append(w.astype(jnp.bfloat16))
            params.append(packed)
        else:      # output head: pad columns to a lane-dense width
            w_pad = jnp.pad(w, ((0, 0), (0, OUT_PAD - fan_out)))
            b_pad = jnp.pad(b, (0, OUT_PAD - fan_out))[None, :]
            params.append(w_pad.astype(jnp.bfloat16))
            params.append(b_pad)
    return tuple(params)


def _reference_forward(x, params, action_dim):
    """Pure-JAX reference (same bf16 weights, f32 accumulation, PyTorch-style LN)."""
    w1, p1, w2, p2, w3, p3, w4, b4 = params

    def ln_relu(h, p):
        h = h + p[0:1]
        mu = jnp.mean(h, axis=-1, keepdims=True)
        var = jnp.mean((h - mu) ** 2, axis=-1, keepdims=True)
        return jnp.maximum((h - mu) / jnp.sqrt(var + LN_EPS) * p[1:2] + p[2:3], 0.0)

    h = ln_relu(jnp.dot(x.astype(jnp.bfloat16), w1, preferred_element_type=jnp.float32), p1)
    h = ln_relu(jnp.dot(h.astype(jnp.bfloat16), w2, preferred_element_type=jnp.float32), p2)
    h = ln_relu(jnp.dot(h.astype(jnp.bfloat16), w3, preferred_element_type=jnp.float32), p3)
    out = jnp.dot(h.astype(jnp.bfloat16), w4, preferred_element_type=jnp.float32) + b4
    return out[:, :action_dim]


if __name__ == "__main__":
    # Small DQN-flavored shapes: 20 states of dim 16, 4 actions.
    # tb=16 exercises the batch grid (pad 20 -> 32, grid=(2,)) and output slicing.
    B, INPUT_DIM, ACTION_DIM = 20, 16, 4

    key = jax.random.PRNGKey(0)
    kx, kp = jax.random.split(key)
    x = jax.random.normal(kx, (B, INPUT_DIM), jnp.float32)
    params = init_params(kp, INPUT_DIM, ACTION_DIM)

    q_values = dqn_forward(x, params, ACTION_DIM, tb=16)
    q_values = jax.block_until_ready(q_values)

    ref = _reference_forward(x, params, ACTION_DIM)
    assert q_values.shape == (B, ACTION_DIM)
    assert jnp.allclose(q_values, ref, atol=1e-3, rtol=1e-3), (
        float(jnp.max(jnp.abs(q_values - ref))))

    print("KERNEL_OK")
</pallas_src>

<mosaic_0001>
module attributes {stable_mosaic.version = 11 : i64} {
  func.func @dqn_kernel(%arg0: i32, %arg1: memref<16x16xf32, #tpu.memory_space<vmem>>, %arg2: memref<16x512xbf16, #tpu.memory_space<vmem>>, %arg3: memref<3x512xf32, #tpu.memory_space<vmem>>, %arg4: memref<512x256xbf16, #tpu.memory_space<vmem>>, %arg5: memref<3x256xf32, #tpu.memory_space<vmem>>, %arg6: memref<256x128xbf16, #tpu.memory_space<vmem>>, %arg7: memref<3x128xf32, #tpu.memory_space<vmem>>, %arg8: memref<128x128xbf16, #tpu.memory_space<vmem>>, %arg9: memref<1x128xf32, #tpu.memory_space<vmem>>, %arg10: memref<16x128xf32, #tpu.memory_space<vmem>>) attributes {dimension_semantics = [#tpu.dimension_semantics<parallel>], iteration_bounds = array<i64: 2>, scalar_prefetch = 0 : i64, scratch_operands = 0 : i64, tpu.core_type = #tpu.core_type<tc>, window_params = [{transform_indices = @transform_0, window_bounds = array<i64: 16, 16>}, {pipeline_mode = #tpu.pipeline_mode<synchronous>, transform_indices = @transform_1, window_bounds = array<i64: 16, 512>}, {pipeline_mode = #tpu.pipeline_mode<synchronous>, transform_indices = @transform_2, window_bounds = array<i64: 3, 512>}, {pipeline_mode = #tpu.pipeline_mode<synchronous>, transform_indices = @transform_3, window_bounds = array<i64: 512, 256>}, {pipeline_mode = #tpu.pipeline_mode<synchronous>, transform_indices = @transform_4, window_bounds = array<i64: 3, 256>}, {pipeline_mode = #tpu.pipeline_mode<synchronous>, transform_indices = @transform_5, window_bounds = array<i64: 256, 128>}, {pipeline_mode = #tpu.pipeline_mode<synchronous>, transform_indices = @transform_6, window_bounds = array<i64: 3, 128>}, {pipeline_mode = #tpu.pipeline_mode<synchronous>, transform_indices = @transform_7, window_bounds = array<i64: 128, 128>}, {pipeline_mode = #tpu.pipeline_mode<synchronous>, transform_indices = @transform_8, window_bounds = array<i64: 1, 128>}, {transform_indices = @transform_9, window_bounds = array<i64: 16, 128>}]} {
    %c0 = arith.constant 0 : index
    %c0_0 = arith.constant 0 : index
    %0 = vector.load %arg1[%c0, %c0_0] : memref<16x16xf32, #tpu.memory_space<vmem>>, vector<16x16xf32>
    %1 = arith.truncf %0 : vector<16x16xf32> to vector<16x16xbf16>
    %c0_1 = arith.constant 0 : index
    %c0_2 = arith.constant 0 : index
    %2 = vector.load %arg2[%c0_1, %c0_2] : memref<16x512xbf16, #tpu.memory_space<vmem>>, vector<16x512xbf16>
    %cst = arith.constant dense<0.000000e+00> : vector<16x512xf32>
    %3 = tpu.matmul %1, %2, %cst {dimension_numbers = #tpu.dot_dimension_numbers<[1], [0], [0], [1], [0, 0, 1, 1], [], []>} : vector<16x16xbf16>, vector<16x512xbf16>, vector<16x512xf32> -> vector<16x512xf32>
    %c0_3 = arith.constant 0 : index
    %c0_4 = arith.constant 0 : index
    %4 = vector.load %arg3[%c0_3, %c0_4] : memref<3x512xf32, #tpu.memory_space<vmem>>, vector<3x512xf32>
    %5 = vector.extract_strided_slice %4 {offsets = [0, 0], sizes = [1, 512], strides = [1, 1]} : vector<3x512xf32> to vector<1x512xf32>
    %6 = vector.extract_strided_slice %4 {offsets = [1, 0], sizes = [1, 512], strides = [1, 1]} : vector<3x512xf32> to vector<1x512xf32>
    %7 = vector.extract_strided_slice %4 {offsets = [2, 0], sizes = [1, 512], strides = [1, 1]} : vector<3x512xf32> to vector<1x512xf32>
    %8 = vector.broadcast %5 : vector<1x512xf32> to vector<16x512xf32>
    %9 = arith.addf %3, %8 : vector<16x512xf32>
    %cst_5 = arith.constant dense<0.000000e+00> : vector<16xf32>
    %10 = vector.multi_reduction <add>, %9, %cst_5 [1] : vector<16x512xf32> to vector<16xf32>
    %11 = vector.shape_cast %10 : vector<16xf32> to vector<16x1xf32>
    %cst_6 = arith.constant 5.120000e+02 : f32
    %12 = vector.broadcast %cst_6 : f32 to vector<16x1xf32>
    %13 = arith.divf %11, %12 : vector<16x1xf32>
    %14 = arith.mulf %9, %9 : vector<16x512xf32>
    %cst_7 = arith.constant dense<0.000000e+00> : vector<16xf32>
    %15 = vector.multi_reduction <add>, %14, %cst_7 [1] : vector<16x512xf32> to vector<16xf32>
    %16 = vector.shape_cast %15 : vector<16xf32> to vector<16x1xf32>
    %cst_8 = arith.constant 5.120000e+02 : f32
    %17 = vector.broadcast %cst_8 : f32 to vector<16x1xf32>
    %18 = arith.divf %16, %17 : vector<16x1xf32>
    %19 = arith.mulf %13, %13 : vector<16x1xf32>
    %20 = arith.subf %18, %19 : vector<16x1xf32>
    %cst_9 = arith.constant 9.99999974E-6 : f32
    %21 = vector.broadcast %cst_9 : f32 to vector<16x1xf32>
    %22 = arith.addf %20, %21 : vector<16x1xf32>
    %23 = math.rsqrt %22 : vector<16x1xf32>
    %24 = vector.broadcast %23 : vector<16x1xf32> to vector<16x512xf32>
    %25 = vector.broadcast %6 : vector<1x512xf32> to vector<16x512xf32>
    %26 = arith.mulf %24, %25 : vector<16x512xf32>
    %27 = vector.broadcast %13 : vector<16x1xf32> to vector<16x512xf32>
    %28 = arith.subf %9, %27 : vector<16x512xf32>
    %29 = arith.mulf %28, %26 : vector<16x512xf32>
    %30 = vector.broadcast %7 : vector<1x512xf32> to vector<16x512xf32>
    %31 = arith.addf %29, %30 : vector<16x512xf32>
    %cst_10 = arith.constant 0.000000e+00 : f32
    %32 = vector.broadcast %cst_10 : f32 to vector<16x512xf32>
    %33 = arith.maximumf %31, %32 : vector<16x512xf32>
    %34 = arith.truncf %33 : vector<16x512xf32> to vector<16x512xbf16>
    %c0_11 = arith.constant 0 : index
    %c0_12 = arith.constant 0 : index
    %35 = vector.load %arg4[%c0_11, %c0_12] : memref<512x256xbf16, #tpu.memory_space<vmem>>, vector<512x256xbf16>
    %cst_13 = arith.constant dense<0.000000e+00> : vector<16x256xf32>
    %36 = tpu.matmul %34, %35, %cst_13 {dimension_numbers = #tpu.dot_dimension_numbers<[1], [0], [0], [1], [0, 0, 1, 1], [], []>} : vector<16x512xbf16>, vector<512x256xbf16>, vector<16x256xf32> -> vector<16x256xf32>
    %c0_14 = arith.constant 0 : index
    %c0_15 = arith.constant 0 : index
    %37 = vector.load %arg5[%c0_14, %c0_15] : memref<3x256xf32, #tpu.memory_space<vmem>>, vector<3x256xf32>
    %38 = vector.extract_strided_slice %37 {offsets = [0, 0], sizes = [1, 256], strides = [1, 1]} : vector<3x256xf32> to vector<1x256xf32>
    %39 = vector.extract_strided_slice %37 {offsets = [1, 0], sizes = [1, 256], strides = [1, 1]} : vector<3x256xf32> to vector<1x256xf32>
    %40 = vector.extract_strided_slice %37 {offsets = [2, 0], sizes = [1, 256], strides = [1, 1]} : vector<3x256xf32> to vector<1x256xf32>
    %41 = vector.broadcast %38 : vector<1x256xf32> to vector<16x256xf32>
    %42 = arith.addf %36, %41 : vector<16x256xf32>
    %cst_16 = arith.constant dense<0.000000e+00> : vector<16xf32>
    %43 = vector.multi_reduction <add>, %42, %cst_16 [1] : vector<16x256xf32> to vector<16xf32>
    %44 = vector.shape_cast %43 : vector<16xf32> to vector<16x1xf32>
    %cst_17 = arith.constant 2.560000e+02 : f32
    %45 = vector.broadcast %cst_17 : f32 to vector<16x1xf32>
    %46 = arith.divf %44, %45 : vector<16x1xf32>
    %47 = arith.mulf %42, %42 : vector<16x256xf32>
    %cst_18 = arith.constant dense<0.000000e+00> : vector<16xf32>
    %48 = vector.multi_reduction <add>, %47, %cst_18 [1] : vector<16x256xf32> to vector<16xf32>
    %49 = vector.shape_cast %48 : vector<16xf32> to vector<16x1xf32>
    %cst_19 = arith.constant 2.560000e+02 : f32
    %50 = vector.broadcast %cst_19 : f32 to vector<16x1xf32>
    %51 = arith.divf %49, %50 : vector<16x1xf32>
    %52 = arith.mulf %46, %46 : vector<16x1xf32>
    %53 = arith.subf %51, %52 : vector<16x1xf32>
    %cst_20 = arith.constant 9.99999974E-6 : f32
    %54 = vector.broadcast %cst_20 : f32 to vector<16x1xf32>
    %55 = arith.addf %53, %54 : vector<16x1xf32>
    %56 = math.rsqrt %55 : vector<16x1xf32>
    %57 = vector.broadcast %56 : vector<16x1xf32> to vector<16x256xf32>
    %58 = vector.broadcast %39 : vector<1x256xf32> to vector<16x256xf32>
    %59 = arith.mulf %57, %58 : vector<16x256xf32>
    %60 = vector.broadcast %46 : vector<16x1xf32> to vector<16x256xf32>
    %61 = arith.subf %42, %60 : vector<16x256xf32>
    %62 = arith.mulf %61, %59 : vector<16x256xf32>
    %63 = vector.broadcast %40 : vector<1x256xf32> to vector<16x256xf32>
    %64 = arith.addf %62, %63 : vector<16x256xf32>
    %cst_21 = arith.constant 0.000000e+00 : f32
    %65 = vector.broadcast %cst_21 : f32 to vector<16x256xf32>
    %66 = arith.maximumf %64, %65 : vector<16x256xf32>
    %67 = arith.truncf %66 : vector<16x256xf32> to vector<16x256xbf16>
    %c0_22 = arith.constant 0 : index
    %c0_23 = arith.constant 0 : index
    %68 = vector.load %arg6[%c0_22, %c0_23] : memref<256x128xbf16, #tpu.memory_space<vmem>>, vector<256x128xbf16>
    %cst_24 = arith.constant dense<0.000000e+00> : vector<16x128xf32>
    %69 = tpu.matmul %67, %68, %cst_24 {dimension_numbers = #tpu.dot_dimension_numbers<[1], [0], [0], [1], [0, 0, 1, 1], [], []>} : vector<16x256xbf16>, vector<256x128xbf16>, vector<16x128xf32> -> vector<16x128xf32>
    %c0_25 = arith.constant 0 : index
    %c0_26 = arith.constant 0 : index
    %70 = vector.load %arg7[%c0_25, %c0_26] : memref<3x128xf32, #tpu.memory_space<vmem>>, vector<3x128xf32>
    %71 = vector.extract_strided_slice %70 {offsets = [0, 0], sizes = [1, 128], strides = [1, 1]} : vector<3x128xf32> to vector<1x128xf32>
    %72 = vector.extract_strided_slice %70 {offsets = [1, 0], sizes = [1, 128], strides = [1, 1]} : vector<3x128xf32> to vector<1x128xf32>
    %73 = vector.extract_strided_slice %70 {offsets = [2, 0], sizes = [1, 128], strides = [1, 1]} : vector<3x128xf32> to vector<1x128xf32>
    %74 = vector.broadcast %71 : vector<1x128xf32> to vector<16x128xf32>
    %75 = arith.addf %69, %74 : vector<16x128xf32>
    %cst_27 = arith.constant dense<0.000000e+00> : vector<16xf32>
    %76 = vector.multi_reduction <add>, %75, %cst_27 [1] : vector<16x128xf32> to vector<16xf32>
    %77 = vector.shape_cast %76 : vector<16xf32> to vector<16x1xf32>
    %cst_28 = arith.constant 1.280000e+02 : f32
    %78 = vector.broadcast %cst_28 : f32 to vector<16x1xf32>
    %79 = arith.divf %77, %78 : vector<16x1xf32>
    %80 = arith.mulf %75, %75 : vector<16x128xf32>
    %cst_29 = arith.constant dense<0.000000e+00> : vector<16xf32>
    %81 = vector.multi_reduction <add>, %80, %cst_29 [1] : vector<16x128xf32> to vector<16xf32>
    %82 = vector.shape_cast %81 : vector<16xf32> to vector<16x1xf32>
    %cst_30 = arith.constant 1.280000e+02 : f32
    %83 = vector.broadcast %cst_30 : f32 to vector<16x1xf32>
    %84 = arith.divf %82, %83 : vector<16x1xf32>
    %85 = arith.mulf %79, %79 : vector<16x1xf32>
    %86 = arith.subf %84, %85 : vector<16x1xf32>
    %cst_31 = arith.constant 9.99999974E-6 : f32
    %87 = vector.broadcast %cst_31 : f32 to vector<16x1xf32>
    %88 = arith.addf %86, %87 : vector<16x1xf32>
    %89 = math.rsqrt %88 : vector<16x1xf32>
    %90 = vector.broadcast %89 : vector<16x1xf32> to vector<16x128xf32>
    %91 = vector.broadcast %72 : vector<1x128xf32> to vector<16x128xf32>
    %92 = arith.mulf %90, %91 : vector<16x128xf32>
    %93 = vector.broadcast %79 : vector<16x1xf32> to vector<16x128xf32>
    %94 = arith.subf %75, %93 : vector<16x128xf32>
    %95 = arith.mulf %94, %92 : vector<16x128xf32>
    %96 = vector.broadcast %73 : vector<1x128xf32> to vector<16x128xf32>
    %97 = arith.addf %95, %96 : vector<16x128xf32>
    %cst_32 = arith.constant 0.000000e+00 : f32
    %98 = vector.broadcast %cst_32 : f32 to vector<16x128xf32>
    %99 = arith.maximumf %97, %98 : vector<16x128xf32>
    %100 = arith.truncf %99 : vector<16x128xf32> to vector<16x128xbf16>
    %c0_33 = arith.constant 0 : index
    %c0_34 = arith.constant 0 : index
    %101 = vector.load %arg8[%c0_33, %c0_34] : memref<128x128xbf16, #tpu.memory_space<vmem>>, vector<128x128xbf16>
    %cst_35 = arith.constant dense<0.000000e+00> : vector<16x128xf32>
    %102 = tpu.matmul %100, %101, %cst_35 {dimension_numbers = #tpu.dot_dimension_numbers<[1], [0], [0], [1], [0, 0, 1, 1], [], []>} : vector<16x128xbf16>, vector<128x128xbf16>, vector<16x128xf32> -> vector<16x128xf32>
    %c0_36 = arith.constant 0 : index
    %c0_37 = arith.constant 0 : index
    %103 = vector.load %arg9[%c0_36, %c0_37] : memref<1x128xf32, #tpu.memory_space<vmem>>, vector<1x128xf32>
    %104 = vector.broadcast %103 : vector<1x128xf32> to vector<16x128xf32>
    %105 = arith.addf %102, %104 : vector<16x128xf32>
    %c0_38 = arith.constant 0 : index
    %c0_39 = arith.constant 0 : index
    %106 = vector.load %arg10[%c0_38, %c0_39] : memref<16x128xf32, #tpu.memory_space<vmem>>, vector<16x128xf32>
    tpu.vector_store %arg10[%c0_38, %c0_39], %105 {strides = array<i32>} : memref<16x128xf32, #tpu.memory_space<vmem>>, vector<16x128xf32>,
    return
  }
  func.func @transform_0(%arg0: i32) -> (i32, i32) {
    %c0_i32 = arith.constant 0 : i32
    %c0_i32_0 = arith.constant 0 : i32
    return %arg0, %c0_i32 : i32, i32
  }
  func.func @transform_1(%arg0: i32) -> (i32, i32) {
    %c0_i32 = arith.constant 0 : i32
    %c0_i32_0 = arith.constant 0 : i32
    %c0_i32_1 = arith.constant 0 : i32
    return %c0_i32, %c0_i32_0 : i32, i32
  }
  func.func @transform_2(%arg0: i32) -> (i32, i32) {
    %c0_i32 = arith.constant 0 : i32
    %c0_i32_0 = arith.constant 0 : i32
    %c0_i32_1 = arith.constant 0 : i32
    return %c0_i32, %c0_i32_0 : i32, i32
  }
  func.func @transform_3(%arg0: i32) -> (i32, i32) {
    %c0_i32 = arith.constant 0 : i32
    %c0_i32_0 = arith.constant 0 : i32
    %c0_i32_1 = arith.constant 0 : i32
    return %c0_i32, %c0_i32_0 : i32, i32
  }
  func.func @transform_4(%arg0: i32) -> (i32, i32) {
    %c0_i32 = arith.constant 0 : i32
    %c0_i32_0 = arith.constant 0 : i32
    %c0_i32_1 = arith.constant 0 : i32
    return %c0_i32, %c0_i32_0 : i32, i32
  }
  func.func @transform_5(%arg0: i32) -> (i32, i32) {
    %c0_i32 = arith.constant 0 : i32
    %c0_i32_0 = arith.constant 0 : i32
    %c0_i32_1 = arith.constant 0 : i32
    return %c0_i32, %c0_i32_0 : i32, i32
  }
  func.func @transform_6(%arg0: i32) -> (i32, i32) {
    %c0_i32 = arith.constant 0 : i32
    %c0_i32_0 = arith.constant 0 : i32
    %c0_i32_1 = arith.constant 0 : i32
    return %c0_i32, %c0_i32_0 : i32, i32
  }
  func.func @transform_7(%arg0: i32) -> (i32, i32) {
    %c0_i32 = arith.constant 0 : i32
    %c0_i32_0 = arith.constant 0 : i32
    %c0_i32_1 = arith.constant 0 : i32
    return %c0_i32, %c0_i32_0 : i32, i32
  }
  func.func @transform_8(%arg0: i32) -> (i32, i32) {
    %c0_i32 = arith.constant 0 : i32
    %c0_i32_0 = arith.constant 0 : i32
    %c0_i32_1 = arith.constant 0 : i32
    return %c0_i32, %c0_i32_0 : i32, i32
  }
  func.func @transform_9(%arg0: i32) -> (i32, i32) {
    %c0_i32 = arith.constant 0 : i32
    %c0_i32_0 = arith.constant 0 : i32
    return %arg0, %c0_i32 : i32, i32
  }
}

</mosaic_0001>

<bundles_post_ra>
// kernel: tpu_custom_call.1
= control target key start
LH: loop header
LB: loop body
LE: loop exit
PB: predicated region body
PF: predicated region fallthrough
CT: control target
= control target key end

     0   :  { %s2846_s0 = inlined_call_operand.vmem [shape: f32[32,16], index: 0, kind: input, shape index: {}]   ;;  %s2847_s1 = inlined_call_operand.vmem [shape: bf16[16,512], index: 1, kind: input, shape index: {}]   ;;  %s2848_s2 = inlined_call_operand.vmem [shape: f32[3,512], index: 2, kind: input, shape index: {}]   ;;  %s2849_s3 = inlined_call_operand.hbm [shape: bf16[512,256], index: 3, kind: input, shape index: {}]   ;;  %s2850_s4 = inlined_call_operand.hbm [shape: f32[3,256], index: 4, kind: input, shape index: {}]   ;;  %s2851_s5 = inlined_call_operand.hbm [shape: bf16[256,128], index: 5, kind: input, shape index: {}]   ;;  %s2852_s6 = inlined_call_operand.vmem [shape: f32[3,128], index: 6, kind: input, shape index: {}]   ;;  %s2853_s7 = inlined_call_operand.hbm [shape: bf16[128,128], index: 7, kind: input, shape index: {}]   ;;  %s2854_s8 = inlined_call_operand.vmem [shape: f32[1,128], index: 8, kind: input, shape index: {}]   ;;  %s2855_s9 = inlined_call_operand.hbm [shape: f32[32,128], index: 9, kind: output, shape index: {}]  }
   0x1   :  { %2860 = sst [smem:[#allocation19_spill]] %s2849_s3 }
   0x2   :  { %2861 = sst [smem:[#allocation20_spill]] %s2850_s4 }
   0x3   :  { %14 = vsyncpa [#allocation3], 0 }
   0x4   :  { %15 = vsyncpa [#allocation6], 0 }
   0x5   :  { %16 = vsyncpa [#allocation9], 0 }
   0x6   :  { %17 = vsyncpa [#allocation4], 0 }
   0x7   :  { %19 = vsyncpa [#allocation4 + $0x1], 0  ;;  %s2500_s30 = smov 0   ;;  %s2502_s10 = smov 0  }
   0x8   :  { %s2504_s11 = smov 0   ;;  %s2506_s12 = smov 0  }
   0x9 LB: > { %2862 = sst [smem:[#allocation15_spill]] %s2431_s11  ;;  %s2521_s13 = sadd.s32 4294967295, %s2435_s12   ;;  %s2435_s12 = sphi %s2506_s12, %s2873_s12   ;;  %s2431_s11 = sphi %s2504_s11, %s2875_s11   ;;  %s2427_s10 = sphi %s2502_s10, %s2877_s10   ;;  %s2423_s30 = sphi %s2500_s30, %s2876_s30  }
   0xa   : > { %s1648_s14 = sadd.s32 4294967294, %s2435_s12   ;;  %s2525_s15 = sadd.s32 1, %s2435_s12  }
   0xb   : > { %2863 = sst [smem:[#allocation16_spill]] %s2525_s15  ;;  %s226_s16 = sadd.s32 1, %s2431_s11 }
   0xc   : > { %s223_s17 = ssub.s32 %s2435_s12, %s2525_s15  ;;  %p236_p0 = scmp.ne.s32.totalorder %s2431_s11, %s2427_s10 }
   0xd   : > { %p224_p1 = scmp.eq.s32.totalorder %s223_s17, 0  ;;  %p237_p2 = scmp.eq.s32.totalorder %s2521_s13, 1 }
   0xe   : > { %p242_p3 = scmp.ne.s32.totalorder %s2427_s10, %s2423_s30  ;;  %p243_p4 = scmp.eq.s32.totalorder %s1648_s14, 1 }
   0xf   : > { %s2536_s18 = scalar_select %p224_p1, %s2431_s11, %s226_s16  }
  0x10   : > { %p2538_p5 = por %p237_p2, %p236_p0  ;;  %p2542_p6 = por %p243_p4, %p242_p3 }
  0x11   : > { %2864 = sst [smem:[#allocation17_spill]] %s2536_s18  ;;  %p1649_p7 = scmp.ge.s32.totalorder %s2435_s12, 1 }
  0x12   : > { %s2866_s20 = scalar_select %p2542_p6, 1, 0 }
  0x13   : > { %p250_p8 = scmp.lt.s32.totalorder %s2435_s12, 3  ;;  %p2168_p9 = scmp.eq.s32.totalorder %s2521_s13, 0 }
  0x14   : > { %2867 = sst [smem:[#allocation18_spill]] %s2866_s20  ;;  %s2437_s25 = smov [#allocation5]  }
  0x15   : > { %p2549_p10 = pnand %p1649_p7, %p250_p8  ;;  %s2869_s4 = sld [smem:[#allocation20_spill]] }
  0x16   : > { %s284_s26 = sshll.u32 %s2437_s25, 4  ;;  %s2870_s3 = sld [smem:[#allocation19_spill]]  ;;  %s285_s26 = int_to_ptr.vmem [resolvable:$true] %s284_s26 }
  0x17   : > { %p2151_p11 = pneg %p2549_p10  ;;  %s2438_s16 = smov [#allocation2]  }
  0x18   : > { %s269_s17 = sshll.u32 %s2438_s16, 4  ;;  %s2439_s22 = smov 128   ;;  %s270_s17 = int_to_ptr.vmem [resolvable:$true] %s269_s17 }
  0x19   : > { %p2563_p12 = pnand %p2168_p9, %p2151_p11  ;;  %s2440_s23 = smov 8  }
  0x1a   : > { %s293_s28 = sshll.u32 %s2851_s5, 4  ;;  %s310_s16 = sshll.u32 %s2853_s7, 4  ;;  %s294_s28 = int_to_ptr.hbm [resolvable:$true] %s293_s28  ;;  %s311_s16 = int_to_ptr.hbm [resolvable:$true] %s310_s16 }
  0x1b   : > { %s282_s24 = sshll.u32 %s2869_s4, 4  ;;  %s2442_s15 = smov 64   ;;  %s283_s24 = int_to_ptr.hbm [resolvable:$true] %s282_s24 }
  0x1c   : > { %s267_s29 = sshll.u32 %s2870_s3, 4  ;;  %s2441_s3 = smov [#allocation7]   ;;  %s268_s29 = int_to_ptr.hbm [resolvable:$true] %s267_s29 }
  0x1d   : > { %2157 = dma.hbm_to_vmem [thread:$0]  (!%p2563_p12), %s283_s24, 128, %s285_s26, [#allocation6]  }
  0x1e   : > { %2154 = dma.hbm_to_vmem [thread:$0]  (!%p2563_p12), %s268_s29, 8192, %s270_s17, [#allocation3], %s2439_s22, %s2439_s22, %s2440_s23  }
  0x1f   : > { %s295_s4 = sshll.u32 %s2441_s3, 4  ;;  %s2443_s24 = smov 4   ;;  %s296_s4 = int_to_ptr.vmem [resolvable:$true] %s295_s4 }
  0x20   : > { %2160 = dma.hbm_to_vmem [thread:$0]  (!%p2563_p12), %s294_s28, 2048, %s296_s4, [#allocation6], %s2442_s15, %s2442_s15, %s2443_s24  }
  0x21   : > { %s2444_s26 = smov [#allocation8]   ;;  %340 = sbr.rel (%p2549_p10) target bundleno = 1115 (0x45b), region = 56 }
  0x22   : > { %s312_s20 = sshll.u32 %s2444_s26, 4  ;;  %s313_s20 = int_to_ptr.vmem [resolvable:$true] %s312_s20 }
  0x23   : > { %2163 = dma.hbm_to_vmem [thread:$0]  (!%p2563_p12), %s311_s16, 1024, %s313_s20, [#allocation9], %s2442_s15, %s2442_s15, %s2443_s24  }
  0x26   : > { %2406 = dma.done.wait (%p2168_p9), [#allocation3], 8192  }
  0x27   : > { %2408 = vsyncadd (%p2168_p9), [#allocation3], 4294959104 }
  0x28   : > { %2410 = dma.done.wait (%p2168_p9), [#allocation6], 2176  }
  0x29   : > { %2412 = vsyncadd (%p2168_p9), [#allocation6], 4294965120 }
  0x2a   : > { %2414 = dma.done.wait (%p2168_p9), [#allocation9], 1024  }
  0x2b   : > { %2416 = vsyncadd (%p2168_p9), [#allocation9], 4294966272  ;;  %s1661_s3 = sshll.u32 %s2521_s13, 1  ;;  %v1665_v0 = vld [vmem:[%s2847_s1] sm:$0xf]  ;;  %vm443_vm0 = vcmask 130048  }
  0x2c   : > { %p393_p13 = scmp.lt.s32.totalorder %s1661_s3, 3  ;;  %v2042_v1 = vld [vmem:[%s2847_s1 + $0xc] sm:$0xf0]  ;;  %v1673_v2 = vld [vmem:[%s2847_s1 + $0x8] sm:$0xf]  ;;  %s389_s17 = sand.u32 1, %s2427_s10  }
  0x2d   : > { %v1666_v3 = vor.u32 %v2042_v1, %v1665_v0  ;;  %v2043_v4 = vld [vmem:[%s2847_s1 + $0x14] sm:$0xf0]  ;;  %v2041_v9 = vld [vmem:[%s2847_s1 + $0xc] sm:$0xf]  ;;  %v1675_v10 = vld [vmem:[%s2847_s1 + $0x18] sm:$0xf0] }
  0x2e   : > { %s2879_s3 = smov (!%p393_p13, %s1661_s3), 3  ;;  %v1674_v7 = vor.u32 %v2043_v4, %v1673_v2  ;;  %v2040_v11 = vld [vmem:[%s2847_s1 + $0x4] sm:$0xf]  ;;  %v1678_v12 = vor.u32 %v2041_v9, %v1675_v10  ;;  %v1667_v13 = vld [vmem:[%s2847_s1 + $0x10] sm:$0xf0]  ;;  %s1660_s22 = sshll.u32 %s389_s17, 4 }
  0x2f   : > { %s1662_s4 = sshll.u32 %s2879_s3, 3  ;;  %454 = vmatpush.bf16.msra.mxu3 %v1666_v3  ;;  %v1670_v14 = vor.u32 %v2040_v11, %v1667_v13  ;;  %v2626_v15 = vld [vmem:[%s2848_s2] sm:$0x77]  ;;  %v2633_v18 = vld [vmem:[%s2848_s2 + $0x8] sm:$0x77]  ;;  %s2132_s27 = sshll.u32 %s2521_s13, 4 }
  0x30   : > { %s396_s18 = scalar_lea.vmem %s2846_s0, %s1662_s4  ;;  %482 = vmatpush.bf16.msra.mxu2 %v1674_v7  ;;  %v411_v16 = vperm.slane %v2626_v15, 0  ;;  %v412_v17 = vperm.slane %v2626_v15, 4  ;;  %v413_v23 = vperm.slane %v2633_v18, 0  ;;  %v414_v29 = vperm.slane %v2633_v18, 4  ;;  %v1741_v61 = vld [vmem:[#allocation2 + $0x70] sm:$0xf]  ;;  %s1541_s26 = scalar_lea.hbm %s2855_s9, %s2132_s27 }
  0x31   : > { %v400_v5 = vld [vmem:[%s396_s18] sm:$0xff]  ;;  %v401_v6 = vld [vmem:[%s396_s18 + $0x8] sm:$0xff]  ;;  %468 = vmatpush.bf16.msra.mxu1 %v1670_v14  ;;  %v2059_v62 = vld [vmem:[#allocation2 + $0x74] sm:$0xf0]  ;;  %s391_s28 = scalar_lea.vmem [#allocation10], %s1660_s22  ;;  %s1544_s4 = sshll.u32 %s1541_s26, 4  ;;  %s1545_s4 = int_to_ptr.hbm [resolvable:$true] %s1544_s4 }
  0x32   : > { %v402_v8 = vpack.c.bf16 %v401_v6, %v400_v5  ;;  %v419_v21 = vperm.slane %v411_v16, 0  ;;  %v420_v22 = vperm.slane %v412_v17, 0  ;;  %v421_v26 = vperm.slane %v413_v23, 0  ;;  %v1805_v63 = vld [vmem:[#allocation2 + $0xf0] sm:$0xf]  ;;  %s1542_s3 = sshll.u32 %s391_s28, 4  ;;  %s1543_s3 = int_to_ptr.vmem [resolvable:$true] %s1542_s3 }
  0x33   : > { %496 = vmatpush.bf16.msrb.mxu3 %v1678_v12  ;;  %v422_v34 = vperm.slane %v414_v29, 0  ;;  %v1742_v0 = vor.u32 %v2059_v62, %v1741_v61  ;;  %v2075_v1 = vld [vmem:[#allocation2 + $0xf4] sm:$0xf0]  ;;  %v1869_v2 = vld [vmem:[#allocation2 + $0x170] sm:$0xf]  ;;  %v2445_v17 = vmov 512.0  }
  0x34   : > { %1679 = vmatmul.msk.bf16.vlgmr.msra.gmra.mxu3 %vm443_vm0, %v402_v8  ;;  %1681 = vmatmul.msk.bf16.vlgmr.msra.gmra.mxu2 %vm443_vm0, %v402_v8  ;;  %v2091_v3 = vld [vmem:[#allocation2 + $0x174] sm:$0xf0]  ;;  %v1806_v4 = vor.u32 %v2075_v1, %v1805_v63  ;;  %v1933_v6 = vld [vmem:[#allocation2 + $0x1f0] sm:$0xf]  ;;  %v1733_v9 = vld [vmem:[#allocation2 + $0x60] sm:$0xf]  ;;  %2223 = vrcp.f32 %v2445_v17 }
  0x35   : > { %1680 = vmatmul.msk.bf16.vlgmr.msra.gmra.mxu1 %vm443_vm0, %v402_v8  ;;  %v1870_v5 = vor.u32 %v2091_v3, %v1869_v2  ;;  %v2107_v7 = vld [vmem:[#allocation2 + $0x1f4] sm:$0xf0]  ;;  %1028 = vmatpush.bf16.msra.mxu0 %v1742_v0  ;;  %v2057_v10 = vld [vmem:[#allocation2 + $0x64] sm:$0xf0]  ;;  %v1797_v11 = vld [vmem:[#allocation2 + $0xe0] sm:$0xf] }
  0x36   : > { %1042 = vmatpush.bf16.msrb.mxu1 %v1806_v4  ;;  %v1734_v12 = vor.u32 %v2057_v10, %v1733_v9  ;;  %v2073_v13 = vld [vmem:[#allocation2 + $0xe4] sm:$0xf0]  ;;  %v1861_v14 = vld [vmem:[#allocation2 + $0x160] sm:$0xf]  ;;  %v2067_v62 = vld [vmem:[#allocation2 + $0xb4] sm:$0xf0] }
  0x37   : > { %1056 = vmatpush.bf16.msrb.mxu2 %v1870_v5  ;;  %v2089_v16 = vld [vmem:[#allocation2 + $0x164] sm:$0xf0]  ;;  %v1837_v63 = vld [vmem:[#allocation2 + $0x130] sm:$0xf]  ;;  %v2083_v0 = vld [vmem:[#allocation2 + $0x134] sm:$0xf0] }
  0x38   : > { %v1838_v2 = vor.u32 %v2083_v0, %v1837_v63  ;;  %v1901_v3 = vld [vmem:[#allocation2 + $0x1b0] sm:$0xf]  ;;  %v2099_v4 = vld [vmem:[#allocation2 + $0x1b4] sm:$0xf0]  ;;  %v1765_v9 = vld [vmem:[#allocation2 + $0xa0] sm:$0xf] }
  0x39   : > { %1029 = vmatpush.bf16.msra.mxu0 %v1734_v12  ;;  %v1829_v12 = vld [vmem:[#allocation2 + $0x120] sm:$0xf]  ;;  %v2090_v63 = vld [vmem:[#allocation2 + $0x174] sm:$0xf]  ;;  %v1871_v0 = vld [vmem:[#allocation2 + $0x178] sm:$0xf0] }
  0x3a   : > { %v1893_v17 = vld [vmem:[#allocation2 + $0x1a0] sm:$0xf]  ;;  %s1530_s11 = scalar_lea.sflag [#allocation4], %s389_s17  ;;  %s2375_s15 = sshra.s32 %s1545_s4, 4  ;;  %s2376_s15 = int_to_ptr.hbm [resolvable:$true] %s2375_s15 }
  0x3b   : > { %s2377_s18 = scalar_lea.hbm %s2376_s15, 16  ;;  %s2381_s21 = scalar_lea.hbm %s2855_s9, 32 }
  0x3c   : > { %p2378_p0 = scmp.ne.s32.totalorder %s2376_s15, %s2377_s18  ;;  %p2382_p3 = scmp.lt.s32.totalorder %s2376_s15, %s2855_s9 }
  0x3d   : > { %p2383_p4 = scmp.lt.s32.totalorder %s2381_s21, %s2377_s18 }
  0x3e   : > { %p2379_p1 = pnand %p2378_p0, %p2538_p5 }
  0x3f   : > { %p2384_p7 = por %p2383_p4, %p2382_p3 }
  0x40   : > { %p2380_p2 = pneg %p2379_p1 }
  0x42   : > { %p2385_p8 = pnand %p2384_p7, %p2380_p2 }
  0x44   : > { %1682 = vmatmul.msk.bf16.vlgmr.msrb.gmra.mxu3 %vm443_vm0, %v402_v8  ;;  %v1934_v8 = vor.u32 %v2107_v7, %v1933_v6  ;;  %v1902_v6 = vor.u32 %v2099_v4, %v1901_v3  ;;  %v1701_v7 = vld [vmem:[#allocation2 + $0x20] sm:$0xf]  ;;  %v1935_v3 = vld [vmem:[#allocation2 + $0x1f8] sm:$0xf0]  ;;  %v2056_v4 = vld [vmem:[#allocation2 + $0x64] sm:$0xf] }
  0x46   : > { %1070 = vmatpush.bf16.msra.mxu3 %v1934_v8  ;;  %v2049_v8 = vld [vmem:[#allocation2 + $0x24] sm:$0xf0] }
  0x47   : > { %v1702_v10 = vor.u32 %v2049_v8, %v1701_v7 }
  0xb2   : > { %v470_v20 = vpop.f32.mrf.mxu1 }
  0xb3   : > { %v2638_v25 = vadd.f32 %v470_v20, %v420_v22  ;;  %v1862_v20 = vor.u32 %v2089_v16, %v1861_v14 }
  0xb5   : > { %v523_v31 = vmul.f32 %v2638_v25, %v2638_v25  ;;  %1057 = vmatpush.bf16.msrb.mxu2 %v1862_v20 }
  0xb7   : > { %v456_v19 = vpop.f32.mrf.mxu3  ;;  %v484_v27 = vpop.f32.mrf.mxu2 }
  0xb8   : > { %v2636_v24 = vadd.f32 %v456_v19, %v419_v21  ;;  %v2645_v32 = vadd.f32 %v484_v27, %v421_v26  ;;  %v1798_v19 = vor.u32 %v2073_v13, %v1797_v11  ;;  %v2055_v27 = vld [vmem:[#allocation2 + $0x54] sm:$0xf0]  ;;  %v2065_v11 = vld [vmem:[#allocation2 + $0xa4] sm:$0xf0] }
  0xb9   : > { %v2081_v13 = vld [vmem:[#allocation2 + $0x124] sm:$0xf0]  ;;  %v1766_v14 = vor.u32 %v2065_v11, %v1765_v9  ;;  %v2072_v9 = vld [vmem:[#allocation2 + $0xe4] sm:$0xf] }
  0xba   : > { %v522_v30 = vmul.f32 %v2636_v24, %v2636_v24  ;;  %v472_v33 = vpop.f32.mrf.mxu1  ;;  %v503_v35 = vadd.f32 %v2638_v25, %v2636_v24  ;;  %v524_v37 = vmul.f32 %v2645_v32, %v2645_v32  ;;  %1043 = vmatpush.bf16.msrb.mxu1 %v1798_v19  ;;  %v1830_v16 = vor.u32 %v2081_v13, %v1829_v12  ;;  %v2097_v19 = vld [vmem:[#allocation2 + $0x1a4] sm:$0xf0]  ;;  %v1863_v13 = vld [vmem:[#allocation2 + $0x168] sm:$0xf0] }
  0xbb   : > { %v2649_v36 = vadd.f32 %v472_v33, %v420_v22  ;;  %v2105_v22 = vld [vmem:[#allocation2 + $0x1e4] sm:$0xf0]  ;;  %v2087_v33 = vld [vmem:[#allocation2 + $0x154] sm:$0xf0]  ;;  %v1894_v20 = vor.u32 %v2097_v19, %v1893_v17 }
  0xbc   : > { %v530_v38 = vadd.f32 %v523_v31, %v522_v30  ;;  %v504_v43 = vadd.f32 %v503_v35, %v2645_v32  ;;  %v2071_v30 = vld [vmem:[#allocation2 + $0xd4] sm:$0xf0]  ;;  %v1853_v31 = vld [vmem:[#allocation2 + $0x150] sm:$0xf] }
  0xbd   : > { %v527_v44 = vmul.f32 %v2649_v36, %v2649_v36  ;;  %v1854_v35 = vor.u32 %v2087_v33, %v1853_v31 }
  0xbe   : > { %v531_v45 = vadd.f32 %v530_v38, %v524_v37  ;;  %v1917_v37 = vld [vmem:[#allocation2 + $0x1d0] sm:$0xf]  ;;  %v2103_v38 = vld [vmem:[#allocation2 + $0x1d4] sm:$0xf0] }
  0xbf   : > { %v458_v28 = vpop.f32.mrf.mxu3  ;;  %v486_v40 = vpop.f32.mrf.mxu2  ;;  %1058 = vmatpush.bf16.msrb.mxu2 %v1854_v35  ;;  %v2095_v35 = vld [vmem:[#allocation2 + $0x194] sm:$0xf0] }
  0xc0   : > { %v2653_v39 = vadd.f32 %v458_v28, %v419_v21  ;;  %v2662_v47 = vadd.f32 %v486_v40, %v421_v26  ;;  %v1925_v21 = vld [vmem:[#allocation2 + $0x1e0] sm:$0xf]  ;;  %v1725_v26 = vld [vmem:[#allocation2 + $0x50] sm:$0xf]  ;;  %v1918_v40 = vor.u32 %v2103_v38, %v1917_v37 }
  0xc1   : > { %v1926_v23 = vor.u32 %v2105_v22, %v1925_v21  ;;  %v1789_v28 = vld [vmem:[#allocation2 + $0xd0] sm:$0xf]  ;;  %v1726_v29 = vor.u32 %v2055_v27, %v1725_v26 }
  0xc2   : > { %v526_v46 = vmul.f32 %v2653_v39, %v2653_v39  ;;  %v508_v50 = vadd.f32 %v2649_v36, %v2653_v39  ;;  %v528_v52 = vmul.f32 %v2662_v47, %v2662_v47  ;;  %v1693_v22 = vld [vmem:[#allocation2 + $0x10] sm:$0xf] }
  0xc3   : > { %1071 = vmatpush.bf16.msra.mxu3 %v1926_v23  ;;  %1030 = vmatpush.bf16.msra.mxu0 %v1726_v29  ;;  %v2047_v23 = vld [vmem:[#allocation2 + $0x14] sm:$0xf0]  ;;  %v1757_v26 = vld [vmem:[#allocation2 + $0x90] sm:$0xf] }
  0xc4   : > { %v535_v53 = vadd.f32 %v527_v44, %v526_v46  ;;  %v509_v56 = vadd.f32 %v508_v50, %v2662_v47  ;;  %v2053_v44 = vld [vmem:[#allocation2 + $0x44] sm:$0xf0]  ;;  %v1694_v27 = vor.u32 %v2047_v23, %v1693_v22  ;;  %v1821_v29 = vld [vmem:[#allocation2 + $0x110] sm:$0xf]  ;;  %v1727_v22 = vld [vmem:[#allocation2 + $0x58] sm:$0xf0] }
  0xc5   : > { %v2085_v50 = vld [vmem:[#allocation2 + $0x144] sm:$0xf0]  ;;  %v2070_v23 = vld [vmem:[#allocation2 + $0xd4] sm:$0xf] }
  0xc6   : > { %v536_v59 = vadd.f32 %v535_v53, %v528_v52  ;;  %v1909_v53 = vld [vmem:[#allocation2 + $0x1c0] sm:$0xf] }
  0xc7   : > { %v498_v41 = vpop.f32.mrf.mxu3  ;;  %1072 = vmatpush.bf16.msra.mxu3 %v1918_v40  ;;  %v1685_v40 = vld [vmem:[#allocation2] sm:$0xf] }
  0xc8   : > { %v2655_v42 = vadd.f32 %v498_v41, %v422_v34  ;;  %v2677_v41 = vpop.eup %2223 }
  0xc9   : > { %vm518_vm1 = vweird.f32 %v2677_v41 }
  0xca   : > { %v505_v48 = vadd.f32 %v504_v43, %v2655_v42  ;;  %v525_v49 = vmul.f32 %v2655_v42, %v2655_v42  ;;  %v1717_v43 = vld [vmem:[#allocation2 + $0x40] sm:$0xf] }
  0xcb   : > { %v1718_v46 = vor.u32 %v2053_v44, %v1717_v43  ;;  %v2045_v43 = vld [vmem:[#allocation2 + $0x4] sm:$0xf0]  ;;  %v1749_v44 = vld [vmem:[#allocation2 + $0x80] sm:$0xf] }
  0xcc   : > { %506 = vadd.xlane.f32.xlu0 %v505_v48  ;;  %v532_v51 = vadd.f32 %v531_v45, %v525_v49  ;;  %v1781_v45 = vld [vmem:[#allocation2 + $0xc0] sm:$0xf]  ;;  %v2069_v48 = vld [vmem:[#allocation2 + $0xc4] sm:$0xf0] }
  0xcd   : > { %v1845_v49 = vld [vmem:[#allocation2 + $0x140] sm:$0xf]  ;;  %1031 = vmatpush.bf16.msra.mxu0 %v1718_v46  ;;  %v2061_v46 = vld [vmem:[#allocation2 + $0x84] sm:$0xf0] }
  0xce   : > { %533 = vadd.xlane.f32.xlu1 %v532_v51  ;;  %v1782_v51 = vor.u32 %v2069_v48, %v1781_v45  ;;  %v1846_v52 = vor.u32 %v2085_v50, %v1845_v49  ;;  %v1686_v45 = vor.u32 %v2045_v43, %v1685_v40  ;;  %v1813_v48 = vld [vmem:[#allocation2 + $0x100] sm:$0xf]  ;;  %v2077_v49 = vld [vmem:[#allocation2 + $0x104] sm:$0xf0]  ;;  %v1750_v50 = vor.u32 %v2061_v46, %v1749_v44  ;;  %v1719_v43 = vld [vmem:[#allocation2 + $0x48] sm:$0xf0] }
  0xcf   : > { %v500_v54 = vpop.f32.mrf.mxu3  ;;  %v2068_v44 = vld [vmem:[#allocation2 + $0xc4] sm:$0xf] }
  0xd0   : > { %v2671_v55 = vadd.f32 %v500_v54, %v422_v34  ;;  %v1790_v34 = vor.u32 %v2071_v30, %v1789_v28  ;;  %v2101_v54 = vld [vmem:[#allocation2 + $0x1c4] sm:$0xf0]  ;;  %1059 = vmatpush.bf16.msrb.mxu2 %v1846_v52  ;;  %v2063_v28 = vld [vmem:[#allocation2 + $0x94] sm:$0xf0]  ;;  %v1877_v52 = vld [vmem:[#allocation2 + $0x180] sm:$0xf] }
  0xd1   : > { %v2079_v30 = vld [vmem:[#allocation2 + $0x114] sm:$0xf0]  ;;  %v1758_v31 = vor.u32 %v2063_v28, %v1757_v26  ;;  %v1791_v28 = vld [vmem:[#allocation2 + $0xd8] sm:$0xf0] }
  0xd2   : > { %v510_v57 = vadd.f32 %v509_v56, %v2671_v55  ;;  %v529_v58 = vmul.f32 %v2671_v55, %v2671_v55  ;;  %1044 = vmatpush.bf16.msrb.mxu1 %v1790_v34  ;;  %v514_v56 = vmul.f32 512.0, %v2677_v41  ;;  %v1822_v33 = vor.u32 %v2079_v30, %v1821_v29  ;;  %v1885_v34 = vld [vmem:[#allocation2 + $0x190] sm:$0xf]  ;;  %v2086_v29 = vld [vmem:[#allocation2 + $0x154] sm:$0xf] }
  0xd3   : > { %v1886_v37 = vor.u32 %v2095_v35, %v1885_v34  ;;  %v1855_v30 = vld [vmem:[#allocation2 + $0x158] sm:$0xf0]  ;;  %v2102_v34 = vld [vmem:[#allocation2 + $0x1d4] sm:$0xf] }
  0xd4   : > { %511 = vadd.xlane.f32.xlu0 %v510_v57  ;;  %v537_v60 = vadd.f32 %v536_v59, %v529_v58  ;;  %v1910_v57 = vor.u32 %v2101_v54, %v1909_v53  ;;  %v1709_v58 = vld [vmem:[#allocation2 + $0x30] sm:$0xf]  ;;  %v2051_v59 = vld [vmem:[#allocation2 + $0x34] sm:$0xf0]  ;;  %v515_v5 = vsub.f32 1.0, %v514_v56  ;;  %1060 = vmatpush.bf16.msrb.mxu2 %v1838_v2  ;;  %v1874_v2 = vor.u32 %v2090_v63, %v1871_v0 }
  0xd5   : > { %v1710_v61 = vor.u32 %v2051_v59, %v1709_v58  ;;  %v2093_v53 = vld [vmem:[#allocation2 + $0x184] sm:$0xf0]  ;;  %v2058_v54 = vld [vmem:[#allocation2 + $0x74] sm:$0xf]  ;;  %v1807_v59 = vld [vmem:[#allocation2 + $0xf8] sm:$0xf0]  ;;  %v1858_v40 = vor.u32 %v2086_v29, %v1855_v30 }
  0xd6   : > { %538 = vadd.xlane.f32.xlu1 %v537_v60  ;;  %1045 = vmatpush.bf16.msrb.mxu1 %v1782_v51  ;;  %v1773_v60 = vld [vmem:[#allocation2 + $0xb0] sm:$0xf]  ;;  %v516_v21 = vmul.f32 %v2677_v41, %v515_v5  ;;  %v1814_v51 = vor.u32 %v2077_v49, %v1813_v48  ;;  %v1878_v56 = vor.u32 %v2093_v53, %v1877_v52  ;;  %v2074_v58 = vld [vmem:[#allocation2 + $0xf4] sm:$0xf]  ;;  %v1735_v5 = vld [vmem:[#allocation2 + $0x68] sm:$0xf0] }
  0xd7   : > { %1073 = vmatpush.bf16.msra.mxu3 %v1910_v57  ;;  %v1774_v1 = vor.u32 %v2067_v62, %v1773_v60  ;;  %1032 = vmatpush.bf16.msra.mxu0 %v1710_v61  ;;  %v1743_v57 = vld [vmem:[#allocation2 + $0x78] sm:$0xf0]  ;;  %v1810_v62 = vor.u32 %v2074_v58, %v1807_v59  ;;  %v1738_v8 = vor.u32 %v2056_v4, %v1735_v5  ;;  %v2084_v48 = vld [vmem:[#allocation2 + $0x144] sm:$0xf]  ;;  %v1847_v49 = vld [vmem:[#allocation2 + $0x148] sm:$0xf0] }
  0xd8   : > { %1061 = vmatpush.bf16.msrb.mxu2 %v1830_v16  ;;  %v517_v38 = vadd.f32 %v2677_v41, %v516_v21  ;;  %v1746_v61 = vor.u32 %v2058_v54, %v1743_v57  ;;  %v1927_v16 = vld [vmem:[#allocation2 + $0x1e8] sm:$0xf0]  ;;  %v2054_v21 = vld [vmem:[#allocation2 + $0x54] sm:$0xf]  ;;  %v1919_v35 = vld [vmem:[#allocation2 + $0x1d8] sm:$0xf0]  ;;  %v1850_v59 = vor.u32 %v2084_v48, %v1847_v49 }
  0xd9   : > { %v1922_v46 = vor.u32 %v2102_v34, %v1919_v35  ;;  %v1911_v52 = vld [vmem:[#allocation2 + $0x1c8] sm:$0xf0]  ;;  %v568_v57 = vperm.slane %v2626_v15, 1  ;;  %v571_v4 = vperm.slane %v2633_v18, 5 }
  0xda   : > { %1046 = vmatpush.bf16.msrb.mxu1 %v1774_v1  ;;  %v2686_v60 = vsel %vm518_vm1, %v2677_v41, %v517_v38  ;;  %v2106_v1 = vld [vmem:[#allocation2 + $0x1f4] sm:$0xf]  ;;  %v1799_v41 = vld [vmem:[#allocation2 + $0xe8] sm:$0xf0] }
  0xdb   : > { %1074 = vmatpush.bf16.msra.mxu3 %v1902_v6  ;;  %1033 = vmatpush.bf16.msra.mxu0 %v1702_v10  ;;  %v1938_v7 = vor.u32 %v2106_v1, %v1935_v3  ;;  %v2088_v10 = vld [vmem:[#allocation2 + $0x164] sm:$0xf]  ;;  %v1802_v12 = vor.u32 %v2072_v9, %v1799_v41  ;;  %v2704_v1 = vperm.slane %v568_v57, 1  ;;  %v570_v3 = vperm.slane %v2633_v18, 1  ;;  %v1775_v9 = vld [vmem:[#allocation2 + $0xb8] sm:$0xf0] }
  0xdc   : > { %1062 = vmatpush.bf16.msrb.mxu2 %v1822_v33  ;;  %v1866_v19 = vor.u32 %v2088_v10, %v1863_v13  ;;  %v1794_v33 = vor.u32 %v2070_v23, %v1791_v28  ;;  %v2082_v41 = vld [vmem:[#allocation2 + $0x134] sm:$0xf]  ;;  %v1839_v10 = vld [vmem:[#allocation2 + $0x138] sm:$0xf0]  ;;  %v1703_v23 = vld [vmem:[#allocation2 + $0x28] sm:$0xf0] }
  0xdd   : > { %v2718_v28 = vperm.slane %v570_v3, 1  ;;  %v1767_v30 = vld [vmem:[#allocation2 + $0xa8] sm:$0xf0]  ;;  %v2721_v49 = vperm.slane %v571_v4, 1  ;;  %v2094_v57 = vld [vmem:[#allocation2 + $0x194] sm:$0xf] }
  0xde   : > { %1047 = vmatpush.bf16.msrb.mxu1 %v1766_v14  ;;  %v2104_v14 = vld [vmem:[#allocation2 + $0x1e4] sm:$0xf]  ;;  %v1831_v35 = vld [vmem:[#allocation2 + $0x128] sm:$0xf0] }
  0xdf   : > { %1075 = vmatpush.bf16.msra.mxu3 %v1894_v20  ;;  %1034 = vmatpush.bf16.msra.mxu0 %v1694_v27  ;;  %v1930_v20 = vor.u32 %v2104_v14, %v1927_v16  ;;  %v1842_v16 = vor.u32 %v2082_v41, %v1839_v10  ;;  %v2060_v4 = vld [vmem:[#allocation2 + $0x84] sm:$0xf]  ;;  %v1879_v10 = vld [vmem:[#allocation2 + $0x188] sm:$0xf0] }
  0xe0   : > { %1063 = vmatpush.bf16.msrb.mxu2 %v1814_v51  ;;  %v2100_v51 = vld [vmem:[#allocation2 + $0x1c4] sm:$0xf] }
  0xe1   : > { %v2092_v41 = vld [vmem:[#allocation2 + $0x184] sm:$0xf] }
  0xe2   : > { %1048 = vmatpush.bf16.msrb.mxu1 %v1758_v31  ;;  %v1730_v31 = vor.u32 %v2054_v21, %v1727_v22  ;;  %v2048_v22 = vld [vmem:[#allocation2 + $0x24] sm:$0xf] }
  0xe3   : > { %1076 = vmatpush.bf16.msra.mxu3 %v1886_v37  ;;  %1035 = vmatpush.bf16.msra.mxu0 %v1686_v45  ;;  %v2052_v37 = vld [vmem:[#allocation2 + $0x44] sm:$0xf]  ;;  %v1783_v45 = vld [vmem:[#allocation2 + $0xc8] sm:$0xf0]  ;;  %v1706_v29 = vor.u32 %v2048_v22, %v1703_v23  ;;  %v606_v23 = vperm.slane %v2633_v18, 2 }
  0xe4   : > { %1112 = vmatpush.bf16.msra.mxu2 %v1874_v2  ;;  %v1722_v54 = vor.u32 %v2052_v37, %v1719_v43  ;;  %v569_v2 = vperm.slane %v2626_v15, 5  ;;  %v2096_v37 = vld [vmem:[#allocation2 + $0x1a4] sm:$0xf] }
  0xe6   : > { %1049 = vmatpush.bf16.msrb.mxu1 %v1750_v50 }
  0xe7   : > { %1077 = vmatpush.bf16.msra.mxu3 %v1878_v56  ;;  %1084 = vmatpush.bf16.msrb.mxu0 %v1746_v61  ;;  %v1786_v56 = vor.u32 %v2068_v44, %v1783_v45  ;;  %v2046_v44 = vld [vmem:[#allocation2 + $0x14] sm:$0xf]  ;;  %v1695_v45 = vld [vmem:[#allocation2 + $0x18] sm:$0xf0] }
  0xe8   : > { %1113 = vmatpush.bf16.msra.mxu2 %v1866_v19  ;;  %v1903_v19 = vld [vmem:[#allocation2 + $0x1b8] sm:$0xf0] }
  0xea   : > { %1098 = vmatpush.bf16.msra.mxu1 %v1810_v62  ;;  %v1914_v62 = vor.u32 %v2100_v51, %v1911_v52  ;;  %v1698_v51 = vor.u32 %v2046_v44, %v1695_v45  ;;  %v1759_v52 = vld [vmem:[#allocation2 + $0x98] sm:$0xf0] }
  0xeb   : > { %1126 = vmatpush.bf16.msrb.mxu3 %v1938_v7  ;;  %1085 = vmatpush.bf16.msrb.mxu0 %v1738_v8  ;;  %v1711_v7 = vld [vmem:[#allocation2 + $0x38] sm:$0xf0]  ;;  %v2066_v8 = vld [vmem:[#allocation2 + $0xb4] sm:$0xf] }
  0xec   : > { %1114 = vmatpush.bf16.msra.mxu2 %v1858_v40  ;;  %v1778_v14 = vor.u32 %v2066_v8, %v1775_v9  ;;  %v1815_v9 = vld [vmem:[#allocation2 + $0x108] sm:$0xf0] }
  0xee   : > { %1099 = vmatpush.bf16.msra.mxu1 %v1802_v12 }
  0xef   : > { %1127 = vmatpush.bf16.msrb.mxu3 %v1930_v20  ;;  %1086 = vmatpush.bf16.msrb.mxu0 %v1730_v31  ;;  %v2080_v31 = vld [vmem:[#allocation2 + $0x124] sm:$0xf] }
  0xf0   : > { %1115 = vmatpush.bf16.msra.mxu2 %v1850_v59  ;;  %v1834_v40 = vor.u32 %v2080_v31, %v1831_v35  ;;  %v1887_v59 = vld [vmem:[#allocation2 + $0x198] sm:$0xf0] }
  0xf2   : > { %1100 = vmatpush.bf16.msra.mxu1 %v1794_v33 }
  0xf3   : > { %1128 = vmatpush.bf16.msrb.mxu3 %v1922_v46  ;;  %1087 = vmatpush.bf16.msrb.mxu0 %v1722_v54  ;;  %v2062_v46 = vld [vmem:[#allocation2 + $0x94] sm:$0xf] }
  0xf4   : > { %1116 = vmatpush.bf16.msra.mxu2 %v1842_v16  ;;  %v1762_v54 = vor.u32 %v2062_v46, %v1759_v52  ;;  %v605_v16 = vperm.slane %v2626_v15, 6 }
  0xf6   : > { %1101 = vmatpush.bf16.msra.mxu1 %v1786_v56  ;;  %v1823_v56 = vld [vmem:[#allocation2 + $0x118] sm:$0xf0] }
  0xf7   : > { %1129 = vmatpush.bf16.msrb.mxu3 %v1914_v62 }
  0xf8   : > { %1117 = vmatpush.bf16.msra.mxu2 %v1834_v40 }
  0xfa   : > { %1102 = vmatpush.bf16.msra.mxu1 %v1778_v14  ;;  %v604_v14 = vperm.slane %v2626_v15, 2 }
 0x13f   : > { %v507_v6 = vpop.xlane.xlu0 %506 }
 0x140   : > { %v2689_v11 = vmul.f32 %v2686_v60, %v507_v6  ;;  %v2050_v6 = vld [vmem:[#allocation2 + $0x34] sm:$0xf] }
 0x141   : > { %v534_v17 = vpop.xlane.xlu1 %533 }
 0x142   : > { %v540_v26 = vmul.f32 %v534_v17, %v2686_v60  ;;  %v542_v27 = vmul.f32 %v2689_v11, %v2689_v11  ;;  %v2098_v17 = vld [vmem:[#allocation2 + $0x1b4] sm:$0xf] }
 0x143   : > { %v1906_v21 = vor.u32 %v2098_v17, %v1903_v19 }
 0x144   : > { %v544_v38 = vsub.f32 %v540_v26, %v542_v27  ;;  %v2064_v26 = vld [vmem:[#allocation2 + $0xa4] sm:$0xf]  ;;  %v2716_v27 = vperm.slane %v569_v2, 1  ;;  %v1687_v2 = vld [vmem:[#allocation2 + $0x8] sm:$0xf0] }
 0x145   : > { %1130 = vmatpush.bf16.msrb.mxu3 %v1906_v21  ;;  %v1770_v34 = vor.u32 %v2064_v26, %v1767_v30  ;;  %v1882_v21 = vor.u32 %v2092_v41, %v1879_v10  ;;  %v607_v26 = vperm.slane %v2633_v18, 6  ;;  %v590_v18 = vsub.f32 %v2645_v32, %v2689_v11  ;;  %v2759_v10 = vld [vmem:[#allocation5] sm:$0x77] }
 0x146   : > { %v2694_v50 = vadd.f32 1e-05, %v544_v38  ;;  %v1895_v38 = vld [vmem:[#allocation2 + $0x1a8] sm:$0xf0] }
 0x147   : > { %v512_v53 = vpop.xlane.xlu0 %511  ;;  %v1898_v43 = vor.u32 %v2096_v37, %v1895_v38  ;;  %1103 = vmatpush.bf16.msra.mxu1 %v1770_v34  ;;  %v589_v34 = vsub.f32 %v2638_v25, %v2689_v11  ;;  %v612_v37 = vperm.slane %v604_v14, 2  ;;  %v613_v38 = vperm.slane %v605_v16, 2 }
 0x148   : > { %2225 = vrsqrt.f32 %v2694_v50  ;;  %v2699_v58 = vmul.f32 %v2686_v60, %v512_v53  ;;  %v2078_v53 = vld [vmem:[#allocation2 + $0x114] sm:$0xf]  ;;  %vm554_vm3 = vweird.f32 %v2694_v50  ;;  %v702_v14 = vperm.slane %v2759_v10, 0 }
 0x149   : > { %v539_v61 = vpop.xlane.xlu1 %538  ;;  %1131 = vmatpush.bf16.msrb.mxu3 %v1898_v43  ;;  %v1826_v62 = vor.u32 %v2078_v53, %v1823_v56  ;;  %v615_v43 = vperm.slane %v607_v26, 2 }
 0x14a   : > { %v541_v63 = vmul.f32 %v539_v61, %v2686_v60  ;;  %v543_v0 = vmul.f32 %v2699_v58, %v2699_v58  ;;  %v1714_v60 = vor.u32 %v2050_v6, %v1711_v7  ;;  %v2076_v6 = vld [vmem:[#allocation2 + $0x104] sm:$0xf]  ;;  %v595_v25 = vsub.f32 %v2671_v55, %v2699_v58 }
 0x14b   : > { %1104 = vmatpush.bf16.msra.mxu1 %v1762_v54  ;;  %1118 = vmatpush.bf16.msra.mxu2 %v1826_v62 }
 0x14c   : > { %v545_v5 = vsub.f32 %v541_v63, %v543_v0  ;;  %1088 = vmatpush.bf16.msrb.mxu0 %v1714_v60  ;;  %v1890_v63 = vor.u32 %v2094_v57, %v1887_v59  ;;  %v2044_v0 = vld [vmem:[#allocation2 + $0x4] sm:$0xf] }
 0x14d   : > { %v1690_v60 = vor.u32 %v2044_v0, %v1687_v2 }
 0x14e   : > { %v2709_v12 = vpop.eup %2225  ;;  %v2711_v13 = vadd.f32 1e-05, %v545_v5  ;;  %v1751_v5 = vld [vmem:[#allocation2 + $0x88] sm:$0xf0]  ;;  %1132 = vmatpush.bf16.msrb.mxu3 %v1890_v63 }
 0x14f   : > { %v549_v20 = vmul.f32 %v2709_v12, %v2694_v50  ;;  %vm555_vm2 = vweird.f32 %v2709_v12  ;;  %v1754_v17 = vor.u32 %v2060_v4, %v1751_v5 }
 0x150   : > { %2227 = vrsqrt.f32 %v2711_v13  ;;  %1089 = vmatpush.bf16.msrb.mxu0 %v1706_v29  ;;  %vm556_vm4 = vmor %vm554_vm3, %vm555_vm2  ;;  %vm564_vm6 = vweird.f32 %v2711_v13 }
 0x151   : > { %v550_v33 = vmul.f32 %v2709_v12, %v549_v20  ;;  %v1818_v20 = vor.u32 %v2076_v6, %v1815_v9  ;;  %1105 = vmatpush.bf16.msra.mxu1 %v1754_v17 }
 0x152   : > { %1133 = vmatpush.bf16.msrb.mxu3 %v1882_v21  ;;  %v703_v21 = vperm.slane %v2759_v10, 4 }
 0x153   : > { %v551_v48 = vmul.f32 0.5, %v550_v33  ;;  %v588_v33 = vsub.f32 %v2636_v24, %v2689_v11  ;;  %1119 = vmatpush.bf16.msra.mxu2 %v1818_v20  ;;  %v706_v20 = vperm.slane %v702_v14, 0 }
 0x154   : > { %1090 = vmatpush.bf16.msrb.mxu0 %v1698_v51 }
 0x155   : > { %v552_v61 = vsub.f32 1.5, %v551_v48  ;;  %v593_v48 = vsub.f32 %v2649_v36, %v2699_v58 }
 0x156   : > { %v2228_v3 = vpop.eup %2227 }
 0x157   : > { %v553_v7 = vmul.f32 %v2709_v12, %v552_v61  ;;  %v559_v8 = vmul.f32 %v2228_v3, %v2711_v13  ;;  %vm565_vm5 = vweird.f32 %v2228_v3  ;;  %v594_v13 = vsub.f32 %v2662_v47, %v2699_v58 }
 0x158   : > { %1091 = vmatpush.bf16.msrb.mxu0 %v1690_v60  ;;  %vm566_vm7 = vmor %vm564_vm6, %vm565_vm5 }
 0x159   : > { %v557_v19 = vsel %vm556_vm4, %v2709_v12, %v553_v7  ;;  %v560_v50 = vmul.f32 %v2228_v3, %v559_v8  ;;  %v591_v12 = vsub.f32 %v2655_v42, %v2689_v11  ;;  %v614_v42 = vperm.slane %v606_v23, 2 }
 0x15a   : > { %v580_v22 = vmul.f32 %v2704_v1, %v557_v19  ;;  %v581_v30 = vmul.f32 %v2716_v27, %v557_v19  ;;  %v582_v15 = vmul.f32 %v2718_v28, %v557_v19  ;;  %v583_v31 = vmul.f32 %v2721_v49, %v557_v19 }
 0x15b   : > { %v561_v29 = vmul.f32 0.5, %v560_v50  ;;  %v592_v11 = vsub.f32 %v2653_v39, %v2699_v58  ;;  %v707_v23 = vperm.slane %v703_v21, 0 }
 0x15c   : > { %v596_v40 = vmul.f32 %v588_v33, %v580_v22  ;;  %v597_v24 = vmul.f32 %v589_v34, %v581_v30  ;;  %v598_v45 = vmul.f32 %v590_v18, %v582_v15  ;;  %v599_v46 = vmul.f32 %v591_v12, %v583_v31 }
 0x15d   : > { %v562_v35 = vsub.f32 1.5, %v561_v29 }
 0x15e   : > { %v616_v55 = vadd.f32 %v612_v37, %v596_v40  ;;  %v617_v56 = vadd.f32 %v613_v38, %v597_v24  ;;  %v618_v57 = vadd.f32 %v614_v42, %v598_v45  ;;  %v619_v59 = vadd.f32 %v615_v43, %v599_v46 }
 0x15f   : > { %v563_v44 = vmul.f32 %v2228_v3, %v562_v35 }
 0x160   : > { %v624_v58 = vmax.f32 %v616_v55, 0.0 }
 0x161   : > { %v567_v32 = vsel %vm566_vm7, %v2228_v3, %v563_v44  ;;  %v626_v3 = vmax.f32 %v618_v57, 0.0 }
 0x162   : > { %v584_v51 = vmul.f32 %v2704_v1, %v567_v32  ;;  %v585_v52 = vmul.f32 %v2716_v27, %v567_v32  ;;  %v586_v53 = vmul.f32 %v2718_v28, %v567_v32  ;;  %v587_v54 = vmul.f32 %v2721_v49, %v567_v32 }
 0x163   : > { %v625_v1 = vmax.f32 %v617_v56, 0.0  ;;  %v627_v27 = vmax.f32 %v619_v59, 0.0 }
 0x164   : > { %v600_v61 = vmul.f32 %v592_v11, %v584_v51  ;;  %v601_v39 = vmul.f32 %v593_v48, %v585_v52  ;;  %v602_v62 = vmul.f32 %v594_v13, %v586_v53  ;;  %v603_v63 = vmul.f32 %v595_v25, %v587_v54 }
 0x166   : > { %v620_v36 = vadd.f32 %v612_v37, %v600_v61  ;;  %v621_v0 = vadd.f32 %v613_v38, %v601_v39  ;;  %v622_v2 = vadd.f32 %v614_v42, %v602_v62  ;;  %v623_v47 = vadd.f32 %v615_v43, %v603_v63  ;;  %v2115_v63 = vld [vmem:[#allocation7 + $0x38] sm:$0xff] }
 0x167   : > { %v2446_v39 = vmov 256.0  }
 0x168   : > { %v628_v4 = vmax.f32 %v620_v36, 0.0  ;;  %v629_v28 = vmax.f32 %v621_v0, 0.0  ;;  %v630_v5 = vmax.f32 %v622_v2, 0.0  ;;  %v631_v49 = vmax.f32 %v623_v47, 0.0  ;;  %v2123_v36 = vld [vmem:[#allocation7 + $0x78] sm:$0xff]  ;;  %v2114_v2 = vld [vmem:[#allocation7 + $0x30] sm:$0xff] }
 0x169   : > { %2229 = vrcp.f32 %v2446_v39  ;;  %v2122_v47 = vld [vmem:[#allocation7 + $0x70] sm:$0xff] }
 0x16a   : > { %v632_v6 = vpack.c.bf16 %v628_v4, %v624_v58  ;;  %v633_v7 = vpack.c.bf16 %v629_v28, %v625_v1  ;;  %v634_v8 = vpack.c.bf16 %v630_v5, %v626_v3  ;;  %v635_v60 = vpack.c.bf16 %v631_v49, %v627_v27  ;;  %v2113_v1 = vld [vmem:[#allocation7 + $0x28] sm:$0xff]  ;;  %v2112_v4 = vld [vmem:[#allocation7 + $0x20] sm:$0xff]  ;;  %v2111_v49 = vld [vmem:[#allocation7 + $0x18] sm:$0xff] }
 0x16b   : > { %v2121_v3 = vld [vmem:[#allocation7 + $0x68] sm:$0xff]  ;;  %v2120_v28 = vld [vmem:[#allocation7 + $0x60] sm:$0xff] }
 0x16c   : > { %1036 = vmatmul.bf16.vlgmr.msra.gmra.mxu0 %v632_v6  ;;  %1050 = vmatmul.bf16.vlgmr.msrb.gmra.mxu1 %v633_v7 }
 0x16d   : > { %1064 = vmatmul.bf16.vlgmr.msrb.gmra.mxu2 %v634_v8  ;;  %1078 = vmatmul.bf16.vlgmr.msra.gmra.mxu3 %v635_v60 }
 0x16e   : > { %1357 = vmatpush.bf16.msra.mxu0 %v2115_v63  ;;  %1371 = vmatpush.bf16.msrb.mxu1 %v2123_v36 }
 0x16f   : > { %v2230_v62 = vpop.eup %2229 }
 0x170   : > { %v1147_v0 = vmul.f32 256.0, %v2230_v62  ;;  %vm1151_vm8 = vweird.f32 %v2230_v62 }
 0x172   : > { %v1148_v58 = vsub.f32 1.0, %v1147_v0  ;;  %1358 = vmatpush.bf16.msra.mxu0 %v2114_v2  ;;  %1372 = vmatpush.bf16.msrb.mxu1 %v2122_v47 }
 0x174   : > { %v1149_v27 = vmul.f32 %v2230_v62, %v1148_v58 }
 0x176   : > { %1359 = vmatpush.bf16.msra.mxu0 %v2113_v1  ;;  %1373 = vmatpush.bf16.msrb.mxu1 %v2121_v3  ;;  %v1150_v5 = vadd.f32 %v2230_v62, %v1149_v27 }
 0x17a   : > { %1360 = vmatpush.bf16.msra.mxu0 %v2112_v4  ;;  %1374 = vmatpush.bf16.msrb.mxu1 %v2120_v28 }
 0x17c   : > { %1092 = vmatmul.bf16.vlgmr.msrb.gmra.mxu0 %v632_v6  ;;  %1106 = vmatmul.bf16.vlgmr.msra.gmra.mxu1 %v633_v7  ;;  %v2119_v6 = vld [vmem:[#allocation7 + $0x58] sm:$0xff]  ;;  %v1152_v7 = vsel %vm1151_vm8, %v2230_v62, %v1150_v5 }
 0x17d   : > { %1120 = vmatmul.bf16.vlgmr.msra.gmra.mxu2 %v634_v8  ;;  %1134 = vmatmul.bf16.vlgmr.msrb.gmra.mxu3 %v635_v60 }
 0x17e   : > { %1361 = vmatpush.bf16.msra.mxu0 %v2111_v49  ;;  %1375 = vmatpush.bf16.msrb.mxu1 %v2119_v6 }
 0x1e9   : > { %v1037_v9 = vpop.f32.mrf.mxu0  ;;  %v1051_v41 = vpop.f32.mrf.mxu1 }
 0x1ea   : > { %v1038_v22 = vadd.f32 %v1037_v9, %v706_v20  ;;  %v2110_v9 = vld [vmem:[#allocation7 + $0x10] sm:$0xff] }
 0x1eb   : > { %1362 = vmatpush.bf16.msra.mxu0 %v2110_v9 }
 0x1ec   : > { %v1052_v15 = vadd.f32 %v1051_v41, %v1038_v22  ;;  %v2118_v41 = vld [vmem:[#allocation7 + $0x50] sm:$0xff]  ;;  %v2108_v22 = vld [vmem:[#allocation7] sm:$0xff] }
 0x1ed   : > { %1376 = vmatpush.bf16.msrb.mxu1 %v2118_v41 }
 0x1f0   : > { %v1065_v16 = vpop.f32.mrf.mxu2  ;;  %v1079_v17 = vpop.f32.mrf.mxu3 }
 0x1f1   : > { %v1039_v19 = vpop.f32.mrf.mxu0  ;;  %v1053_v50 = vpop.f32.mrf.mxu1  ;;  %v1066_v33 = vadd.f32 %v1065_v16, %v1052_v15 }
 0x1f2   : > { %v1040_v34 = vadd.f32 %v1039_v19, %v706_v20  ;;  %v2109_v19 = vld [vmem:[#allocation7 + $0x8] sm:$0xff] }
 0x1f3   : > { %v2763_v38 = vadd.f32 %v1079_v17, %v1066_v33  ;;  %1363 = vmatpush.bf16.msra.mxu0 %v2109_v19 }
 0x1f4   : > { %v1054_v43 = vadd.f32 %v1053_v50, %v1040_v34  ;;  %v2117_v50 = vld [vmem:[#allocation7 + $0x48] sm:$0xff] }
 0x1f5   : > { %v1155_v25 = vmul.f32 %v2763_v38, %v2763_v38  ;;  %1377 = vmatpush.bf16.msrb.mxu1 %v2117_v50 }
 0x1f7   : > { %1364 = vmatpush.bf16.msra.mxu0 %v2108_v22 }
 0x1f8   : > { %v1067_v26 = vpop.f32.mrf.mxu2  ;;  %v1081_v29 = vpop.f32.mrf.mxu3 }
 0x1f9   : > { %v1093_v30 = vpop.f32.mrf.mxu0  ;;  %v1107_v12 = vpop.f32.mrf.mxu1  ;;  %v1068_v45 = vadd.f32 %v1067_v26, %v1054_v43  ;;  %v2116_v26 = vld [vmem:[#allocation7 + $0x40] sm:$0xff] }
 0x1fa   : > { %v1094_v31 = vadd.f32 %v1093_v30, %v707_v23  ;;  %1378 = vmatpush.bf16.msrb.mxu1 %v2116_v26 }
 0x1fb   : > { %v2773_v52 = vadd.f32 %v1081_v29, %v1068_v45 }
 0x1fc   : > { %v1108_v18 = vadd.f32 %v1107_v12, %v1094_v31 }
 0x1fd   : > { %v1157_v57 = vmul.f32 %v2773_v52, %v2773_v52 }
 0x200   : > { %v1121_v35 = vpop.f32.mrf.mxu2  ;;  %v1135_v37 = vpop.f32.mrf.mxu3 }
 0x201   : > { %v1122_v40 = vadd.f32 %v1121_v35, %v1108_v18  ;;  %v1095_v42 = vpop.f32.mrf.mxu0  ;;  %v1109_v11 = vpop.f32.mrf.mxu1 }
 0x202   : > { %v1096_v24 = vadd.f32 %v1095_v42, %v707_v23  ;;  %v1194_v42 = vperm.slane %v2759_v10, 5 }
 0x203   : > { %v2765_v44 = vadd.f32 %v1135_v37, %v1122_v40  ;;  %v1193_v40 = vperm.slane %v2759_v10, 1 }
 0x204   : > { %v1110_v48 = vadd.f32 %v1109_v11, %v1096_v24 }
 0x205   : > { %v1140_v46 = vadd.f32 %v2765_v44, %v2763_v38  ;;  %v1156_v32 = vmul.f32 %v2765_v44, %v2765_v44 }
 0x207   : > { %1141 = vadd.xlane.f32.xlu2 %v1140_v46  ;;  %v1159_v13 = vadd.f32 %v1156_v32, %v1155_v25  ;;  %v1197_v25 = vperm.slane %v1193_v40, 1  ;;  %v1198_v32 = vperm.slane %v1194_v42, 1 }
 0x208   : > { %v1123_v51 = vpop.f32.mrf.mxu2  ;;  %v1137_v54 = vpop.f32.mrf.mxu3 }
 0x209   : > { %v1124_v53 = vadd.f32 %v1123_v51, %v1110_v48  ;;  %1160 = vadd.xlane.f32.xlu0 %v1159_v13 }
 0x20b   : > { %v2775_v55 = vadd.f32 %v1137_v54, %v1124_v53  ;;  %v1211_v54 = vperm.slane %v2759_v10, 2 }
 0x20d   : > { %v1143_v56 = vadd.f32 %v2775_v55, %v2773_v52  ;;  %v1158_v59 = vmul.f32 %v2775_v55, %v2775_v55  ;;  %v1215_v63 = vperm.slane %v1211_v54, 2 }
 0x20f   : > { %1144 = vadd.xlane.f32.xlu2 %v1143_v56  ;;  %v1162_v61 = vadd.f32 %v1158_v59, %v1157_v57  ;;  %v1212_v56 = vperm.slane %v2759_v10, 6 }
 0x211   : > { %1163 = vadd.xlane.f32.xlu1 %v1162_v61  ;;  %v1216_v0 = vperm.slane %v1212_v56, 2 }
 0x27a   : > { %v1142_v8 = vpop.xlane.xlu2 %1141 }
 0x27b   : > { %v1153_v60 = vmul.f32 %v1152_v7, %v1142_v8 }
 0x27c   : > { %v1161_v14 = vpop.xlane.xlu0 %1160 }
 0x27d   : > { %v1165_v16 = vmul.f32 %v1161_v14, %v1152_v7  ;;  %v1167_v17 = vmul.f32 %v1153_v60, %v1153_v60  ;;  %v1203_v59 = vsub.f32 %v2763_v38, %v1153_v60  ;;  %v1204_v61 = vsub.f32 %v2765_v44, %v1153_v60 }
 0x27f   : > { %v1169_v20 = vsub.f32 %v1165_v16, %v1167_v17 }
 0x281   : > { %v1171_v21 = vadd.f32 1e-05, %v1169_v20 }
 0x282   : > { %v1145_v23 = vpop.xlane.xlu2 %1144 }
 0x283   : > { %2231 = vrsqrt.f32 %v1171_v21  ;;  %v1154_v29 = vmul.f32 %v1152_v7, %v1145_v23  ;;  %vm1179_vm10 = vweird.f32 %v1171_v21  ;;  %v2447_v23 = vmov 128.0  }
 0x284   : > { %v1164_v30 = vpop.xlane.xlu1 %1163 }
 0x285   : > { %v1166_v15 = vmul.f32 %v1164_v30, %v1152_v7  ;;  %v1168_v31 = vmul.f32 %v1154_v29, %v1154_v29  ;;  %v1205_v47 = vsub.f32 %v2773_v52, %v1154_v29  ;;  %v1206_v58 = vsub.f32 %v2775_v55, %v1154_v29  ;;  %v2794_v52 = vld [vmem:[%s2852_s6] sm:$0x7] }
 0x286   : > { %v1260_v55 = vperm.slane %v2794_v52, 0  ;;  %v2131_v29 = vld [vmem:[#allocation8 + $0x38] sm:$0xff] }
 0x287   : > { %v1170_v12 = vsub.f32 %v1166_v15, %v1168_v31  ;;  %1513 = vmatpush.bf16.msrb.mxu2 %v2131_v29  ;;  %v2130_v15 = vld [vmem:[#allocation8 + $0x30] sm:$0xff] }
 0x289   : > { %v2232_v33 = vpop.eup %2231  ;;  %v1172_v34 = vadd.f32 1e-05, %v1170_v12  ;;  %v2129_v12 = vld [vmem:[#allocation8 + $0x28] sm:$0xff] }
 0x28a   : > { %v1174_v18 = vmul.f32 %v2232_v33, %v1171_v21  ;;  %vm1180_vm9 = vweird.f32 %v2232_v33 }
 0x28b   : > { %2233 = vrsqrt.f32 %v1172_v34  ;;  %vm1181_vm11 = vmor %vm1179_vm10, %vm1180_vm9  ;;  %vm1189_vm13 = vweird.f32 %v1172_v34  ;;  %1514 = vmatpush.bf16.msrb.mxu2 %v2130_v15 }
 0x28c   : > { %v1175_v35 = vmul.f32 %v2232_v33, %v1174_v18  ;;  %2235 = vrcp.f32 %v2447_v23 }
 0x28e   : > { %v1176_v37 = vmul.f32 0.5, %v1175_v35  ;;  %v2127_v35 = vld [vmem:[#allocation8 + $0x18] sm:$0xff] }
 0x28f   : > { %1515 = vmatpush.bf16.msrb.mxu2 %v2129_v12 }
 0x290   : > { %v1177_v43 = vsub.f32 1.5, %v1176_v37 }
 0x291   : > { %v2234_v24 = vpop.eup %2233 }
 0x292   : > { %v1178_v45 = vmul.f32 %v2232_v33, %v1177_v43  ;;  %v1184_v46 = vmul.f32 %v2234_v24, %v1172_v34  ;;  %vm1190_vm12 = vweird.f32 %v2234_v24  ;;  %v2236_v26 = vpop.eup %2235  ;;  %v2128_v34 = vld [vmem:[#allocation8 + $0x20] sm:$0xff]  ;;  %v2126_v43 = vld [vmem:[#allocation8 + $0x10] sm:$0xff] }
 0x293   : > { %vm1191_vm14 = vmor %vm1189_vm13, %vm1190_vm12  ;;  %v1390_v30 = vmul.f32 128.0, %v2236_v26  ;;  %vm1394_vm15 = vweird.f32 %v2236_v26  ;;  %1516 = vmatpush.bf16.msrb.mxu2 %v2128_v34 }
 0x294   : > { %v1182_v11 = vsel %vm1181_vm11, %v2232_v33, %v1178_v45  ;;  %v1185_v48 = vmul.f32 %v2234_v24, %v1184_v46 }
 0x295   : > { %v1199_v51 = vmul.f32 %v1197_v25, %v1182_v11  ;;  %v1200_v53 = vmul.f32 %v1198_v32, %v1182_v11  ;;  %v1391_v31 = vsub.f32 1.0, %v1390_v30 }
 0x296   : > { %v1186_v13 = vmul.f32 0.5, %v1185_v48  ;;  %v2124_v48 = vld [vmem:[#allocation8] sm:$0xff] }
 0x297   : > { %v1207_v62 = vmul.f32 %v1203_v59, %v1199_v51  ;;  %v1208_v36 = vmul.f32 %v1204_v61, %v1200_v53  ;;  %v1392_v33 = vmul.f32 %v2236_v26, %v1391_v31  ;;  %1517 = vmatpush.bf16.msrb.mxu2 %v2127_v35 }
 0x298   : > { %v1187_v57 = vsub.f32 1.5, %v1186_v13 }
 0x299   : > { %v1217_v27 = vadd.f32 %v1215_v63, %v1207_v62  ;;  %v1218_v38 = vadd.f32 %v1216_v0, %v1208_v36  ;;  %v1393_v18 = vadd.f32 %v2236_v26, %v1392_v33 }
 0x29a   : > { %v1188_v39 = vmul.f32 %v2234_v24, %v1187_v57 }
 0x29b   : > { %v1221_v5 = vmax.f32 %v1217_v27, 0.0  ;;  %v1222_v6 = vmax.f32 %v1218_v38, 0.0  ;;  %v1395_v37 = vsel %vm1394_vm15, %v2236_v26, %v1393_v18  ;;  %1518 = vmatpush.bf16.msrb.mxu2 %v2126_v43 }
 0x29c   : > { %v1192_v2 = vsel %vm1191_vm14, %v2234_v24, %v1188_v39 }
 0x29d   : > { %v1201_v1 = vmul.f32 %v1197_v25, %v1192_v2  ;;  %v1202_v10 = vmul.f32 %v1198_v32, %v1192_v2  ;;  %v2125_v25 = vld [vmem:[#allocation8 + $0x8] sm:$0xff] }
 0x29f   : > { %v1209_v3 = vmul.f32 %v1205_v47, %v1201_v1  ;;  %v1210_v4 = vmul.f32 %v1206_v58, %v1202_v10  ;;  %1519 = vmatpush.bf16.msrb.mxu2 %v2125_v25  ;;  %v1432_v58 = vperm.slane %v2794_v52, 1 }
 0x2a1   : > { %v1219_v28 = vadd.f32 %v1215_v63, %v1209_v3  ;;  %v1220_v44 = vadd.f32 %v1216_v0, %v1210_v4 }
 0x2a3   : > { %v1223_v49 = vmax.f32 %v1219_v28, 0.0  ;;  %v1224_v7 = vmax.f32 %v1220_v44, 0.0  ;;  %1520 = vmatpush.bf16.msrb.mxu2 %v2124_v48  ;;  %v1439_v44 = vperm.slane %v2794_v52, 2  ;;  %v2222_v52 = vld [vmem:[%s2854_s8] ss:$0 sm:$0xff] }
 0x2a5   : > { %v1225_v8 = vpack.c.bf16 %v1223_v49, %v1221_v5  ;;  %v1226_v60 = vpack.c.bf16 %v1224_v7, %v1222_v6 }
 0x2a7   : > { %1365 = vmatmul.bf16.vlgmr.msra.gmra.mxu0 %v1225_v8  ;;  %1379 = vmatmul.bf16.vlgmr.msrb.gmra.mxu1 %v1226_v60 }
 0x324   : > { %v1366_v9 = vpop.f32.mrf.mxu0  ;;  %v1380_v41 = vpop.f32.mrf.mxu1 }
 0x325   : > { %v1367_v14 = vadd.f32 %v1366_v9, %v1260_v55 }
 0x327   : > { %v2797_v16 = vadd.f32 %v1380_v41, %v1367_v14 }
 0x329   : > { %1385 = vadd.xlane.f32.xlu2 %v2797_v16  ;;  %v1398_v17 = vmul.f32 %v2797_v16, %v2797_v16 }
 0x32b   : > { %1400 = vadd.xlane.f32.xlu1 %v1398_v17 }
 0x32c   : > { %v1368_v19 = vpop.f32.mrf.mxu0  ;;  %v1382_v20 = vpop.f32.mrf.mxu1 }
 0x32d   : > { %v1369_v50 = vadd.f32 %v1368_v19, %v1260_v55 }
 0x32f   : > { %v2802_v21 = vadd.f32 %v1382_v20, %v1369_v50 }
 0x331   : > { %1387 = vadd.xlane.f32.xlu0 %v2802_v21  ;;  %v1399_v22 = vmul.f32 %v2802_v21, %v2802_v21 }
 0x333   : > { %1402 = vadd.xlane.f32.xlu2 %v1399_v22 }
 0x39c   : > { %v1386_v40 = vpop.xlane.xlu2 %1385 }
 0x39d   : > { %v1396_v42 = vmul.f32 %v1395_v37, %v1386_v40 }
 0x39e   : > { %v1401_v24 = vpop.xlane.xlu1 %1400 }
 0x39f   : > { %v1406_v45 = vmul.f32 %v1396_v42, %v1396_v42  ;;  %v1404_v46 = vmul.f32 %v1401_v24, %v1395_v37  ;;  %v1435_v38 = vsub.f32 %v2797_v16, %v1396_v42 }
 0x3a1   : > { %v1408_v32 = vsub.f32 %v1404_v46, %v1406_v45 }
 0x3a3   : > { %v1410_v11 = vadd.f32 1e-05, %v1408_v32 }
 0x3a4   : > { %v1388_v13 = vpop.xlane.xlu0 %1387 }
 0x3a5   : > { %2237 = vrsqrt.f32 %v1410_v11  ;;  %v1397_v51 = vmul.f32 %v1395_v37, %v1388_v13  ;;  %vm1418_vm1 = vweird.f32 %v1410_v11 }
 0x3a6   : > { %v1403_v53 = vpop.xlane.xlu2 %1402 }
 0x3a7   : > { %v1407_v54 = vmul.f32 %v1397_v51, %v1397_v51  ;;  %v1405_v56 = vmul.f32 %v1403_v53, %v1395_v37  ;;  %v1436_v6 = vsub.f32 %v2802_v21, %v1397_v51 }
 0x3a9   : > { %v1409_v57 = vsub.f32 %v1405_v56, %v1407_v54 }
 0x3ab   : > { %v2238_v59 = vpop.eup %2237  ;;  %v1411_v61 = vadd.f32 1e-05, %v1409_v57 }
 0x3ac   : > { %v1413_v39 = vmul.f32 %v2238_v59, %v1410_v11  ;;  %vm1419_vm0 = vweird.f32 %v2238_v59 }
 0x3ad   : > { %2239 = vrsqrt.f32 %v1411_v61  ;;  %vm1420_vm2 = vmor %vm1418_vm1, %vm1419_vm0  ;;  %vm1428_vm4 = vweird.f32 %v1411_v61 }
 0x3ae   : > { %v1414_v62 = vmul.f32 %v2238_v59, %v1413_v39 }
 0x3b0   : > { %v1415_v63 = vmul.f32 0.5, %v1414_v62 }
 0x3b2   : > { %v1416_v36 = vsub.f32 1.5, %v1415_v63 }
 0x3b3   : > { %v2240_v0 = vpop.eup %2239 }
 0x3b4   : > { %v1417_v2 = vmul.f32 %v2238_v59, %v1416_v36  ;;  %v1423_v47 = vmul.f32 %v2240_v0, %v1411_v61  ;;  %vm1429_vm3 = vweird.f32 %v2240_v0 }
 0x3b5   : > { %vm1430_vm5 = vmor %vm1428_vm4, %vm1429_vm3 }
 0x3b6   : > { %v1421_v1 = vsel %vm1420_vm2, %v2238_v59, %v1417_v2  ;;  %v1424_v10 = vmul.f32 %v2240_v0, %v1423_v47 }
 0x3b7   : > { %v1433_v27 = vmul.f32 %v1432_v58, %v1421_v1 }
 0x3b8   : > { %v1425_v3 = vmul.f32 0.5, %v1424_v10 }
 0x3b9   : > { %v1437_v5 = vmul.f32 %v1435_v38, %v1433_v27 }
 0x3ba   : > { %v1426_v4 = vsub.f32 1.5, %v1425_v3 }
 0x3bb   : > { %v1440_v60 = vadd.f32 %v1439_v44, %v1437_v5 }
 0x3bc   : > { %v1427_v28 = vmul.f32 %v2240_v0, %v1426_v4 }
 0x3bd   : > { %v1442_v9 = vmax.f32 %v1440_v60, 0.0 }
 0x3be   : > { %v1431_v49 = vsel %vm1430_vm5, %v2240_v0, %v1427_v28 }
 0x3bf   : > { %v1434_v7 = vmul.f32 %v1432_v58, %v1431_v49 }
 0x3c1   : > { %v1438_v8 = vmul.f32 %v1436_v6, %v1434_v7 }
 0x3c3   : > { %v1441_v55 = vadd.f32 %v1439_v44, %v1438_v8 }
 0x3c5   : > { %v1443_v41 = vmax.f32 %v1441_v55, 0.0 }
 0x3c7   : > { %v1444_v14 = vpack.c.bf16 %v1443_v41, %v1442_v9 }
 0x3c9   : > { %1521 = vmatmul.bf16.vlgmr.msrb.gmra.mxu2 %v1444_v14 }
 0x44c   : > { %v1522_v16 = vpop.f32.mrf.mxu2 }
 0x44d   : > { %v1523_v17 = vadd.f32 %v2222_v52, %v1522_v16 }
 0x44f   : > { %1527 = vst [vmem:[%s391_s28] sm:$0xff] %v1523_v17 }
 0x454   : > { %v1524_v19 = vpop.f32.mrf.mxu2 }
 0x455   : > { %v1525_v50 = vadd.f32 %v2222_v52, %v1524_v19 }
 0x457   : > { %1528 = vst [vmem:[%s391_s28 + $0x8] sm:$0xff] %v1525_v50 }
 0x458   : > { %2388 = shalt.err (!%p2385_p8)
}
 0x459   : > { %s2448_s17 = smov 128   ;;  %s2449_s22 = smov 8  }
 0x45a   : > { %2149 = dma.vmem_to_hbm [thread:$0]  (%p2538_p5), %s1543_s3, 256, %s1545_s4, %s1530_s11, %s2448_s17, %s2448_s17, %s2449_s22  }
 0x45b PF: > { %p2176_p9 = scmp.ge.s32.totalorder %s2435_s12, 2  ;;  %s1559_s25 = sand.u32 1, %s2423_s30  }
 0x45c   : > { %s1560_s27 = scalar_lea.sflag [#allocation4], %s1559_s25 }
 0x45d   : > { %p2165_p10 = pnand %p2176_p9, %p2542_p6 }
 0x45f   : > { %p2166_p11 = pneg %p2165_p10 }
 0x461   : > { %2418 = dma.done.wait (%p2166_p11), %s1560_s27, 256  }
 0x462   : > { %2420 = vsyncadd (%p2166_p11), %s1560_s27, 4294967040  ;;  %s2873_s12 = sld [smem:[#allocation16_spill]]  ;;  %s2876_s30 = smov %s2427_s10 }
 0x463   : > { %s2874_s28 = sld [smem:[#allocation15_spill]] }
 0x464   : > { %s2875_s11 = sld [smem:[#allocation17_spill]] }
 0x468   : > { %p22_p12 = scmp.ge.s32.totalorder %s2873_s12, 4  }
 0x469   : > { %s2877_s10 = smov %s2874_s28 }
 0x46a   :  { %24 = sbr.rel (!%p22_p12) target bundleno = 9 (0x9), region = 108 }
 0x46f   :  { %1566 = vsyncpa [#allocation3], 1 }
 0x470   :  { %1568 = vsyncpa [#allocation3 + $0x1], 1 }
 0x471   :  { %1569 = vsyncpa [#allocation6], 1 }
 0x472   :  { %1570 = vsyncpa [#allocation9], 1 }
 0x473   :  { %1571 = vsyncpa [#allocation4], 1 }
 0x474   :  { %1573 = vsyncpa [#allocation4 + $0x1], 1 }

</bundles_post_ra>
